<compile_context>
chip_gen: v7x
topology: tpu7x:2x2x1
jax: 0.10.0
libtpu: 0.0.40
codegen_flags: <defaults>
</compile_context>

<pallas_src>
import jax
import jax.numpy as jnp
from jax import lax
from jax.experimental import pallas as pl
from jax.experimental.pallas import tpu as pltpu

# ---- config (mirrors the yaml config of the PyTorch module) -----------------
VOCAB = 50          # config['vocabulary_size']
TEXT_DIM = 32       # config['text_dim']
HIDDEN = 32         # config['text_hidden']
CLASS_NUM = 2       # config['class_num']
BATCH = 2
SEQ = 8

BPAD = 8                     # batch padded to a full sublane group
NDIR = 4                     # aux_fwd, main_fwd, aux_bwd, main_bwd
NH = NDIR * HIDDEN           # 128: packed hidden/cell state width
NG = 4 * NH                  # 512: packed gate width (i|f|g|o, each NH wide)
WS_ROWS = 4 * NH + 16        # tail-weight slab rows (G1|G2|G3|WPRED|bias band)


# ---- the fused kernel --------------------------------------------------------
def _model_kernel(data_ref, wih_ref, whh_ref, wsmall_ref, out_ref, gsel_ref):
    S, BP, C = SEQ, BPAD, CLASS_NUM
    f32 = jnp.float32

    # ---- one-time lane/column constant masks ----
    col = lax.broadcasted_iota(jnp.int32, (BP, NG), 1)
    is_g_gate = (col >> 7) == 2                       # tanh-gate columns (no pre-scale)
    gscale = jnp.where(is_g_gate, 1.0, 0.5)
    goffset = jnp.where(is_g_gate, 0.0, 0.5)
    sel_fwd = (col & (NH - 1)) < (NH // 2)            # fwd-direction gate columns

    # ---- hoisted input projection (bias folded in via the ones column) ----
    emb = data_ref[S * BP:2 * S * BP, :]                              # (64,128) f32
    proj = jnp.dot(emb.astype(jnp.bfloat16), wih_ref[...],
                   preferred_element_type=f32)                        # (64, NG)

    # per-step fwd/bwd timestep selection, staged in VMEM so the fully
    # unrolled recurrence does not keep the whole proj live in vregs
    for t in range(S):
        rt = S - 1 - t
        gsel_ref[t * BP:(t + 1) * BP, :] = jnp.where(
            sel_fwd,
            proj[t * BP:(t + 1) * BP, :],
            proj[rt * BP:(rt + 1) * BP, :])

    # ---- fused 4-direction LSTM recurrence (fully unrolled, 8 steps) ----
    h = jnp.zeros((BP, NH), f32)
    c = jnp.zeros((BP, NH), f32)
    mx = jnp.full((BP, NH), -10000.0, f32)
    for t in range(S):
        # recurrent weight indexed inside the dot on purpose (no hoisted value)
        gates = gsel_ref[t * BP:(t + 1) * BP, :] + jnp.dot(
            h.astype(jnp.bfloat16), whh_ref[...], preferred_element_type=f32)
        y = jnp.tanh(gates)                # one EUP pass over the whole gate slab
        yf = y * gscale + goffset          # i/f/o: sigmoid(x)=0.5*tanh(x/2)+0.5 ; g: tanh
        i_g = yf[:, 0:NH]
        f_g = yf[:, NH:2 * NH]
        g_g = yf[:, 2 * NH:3 * NH]
        o_g = yf[:, 3 * NH:4 * NH]
        c_new = f_g * c + i_g * g_g
        h_new = o_g * jnp.tanh(c_new)
        # pack_padded_sequence semantics: state advances only on valid steps;
        # fwd lanes check position t, bwd lanes position S-1-t (host-built mask).
        valid = data_ref[t * BP:(t + 1) * BP, :] > 0.5
        h = jnp.where(valid, h_new, h)
        c = jnp.where(valid, c_new, c)
        # masked temporal max-pool (out*mask - 10000*(1-mask)) folded in here
        mx = jnp.maximum(mx, jnp.where(valid, h_new, -10000.0))

    # ---- unmasked max over time of (padded) embeddings for the gate MLP ----
    emb_max = data_ref[S * BP:S * BP + BP, :]
    for t in range(1, S):
        emb_max = jnp.maximum(
            emb_max, data_ref[S * BP + t * BP:S * BP + (t + 1) * BP, :])

    # ---- tail MLPs: all weights live in one lane-dense bf16 slab ----
    bias_blk = wsmall_ref[4 * NH:4 * NH + 16, :].astype(f32)          # (16,128)
    b1 = bias_blk[0:1, :]
    b2 = bias_blk[1:2, :]
    b3 = bias_blk[2:3, :]
    bp = bias_blk[3:4, :]

    h1 = jnp.maximum(
        jnp.dot(emb_max.astype(jnp.bfloat16), wsmall_ref[0:NH, :],
                preferred_element_type=f32) + b1, 0.0)
    h2 = jnp.maximum(
        jnp.dot(h1.astype(jnp.bfloat16), wsmall_ref[NH:2 * NH, :],
                preferred_element_type=f32) + b2, 0.0)
    gl = jnp.dot(h2.astype(jnp.bfloat16), wsmall_ref[2 * NH:3 * NH, :],
                 preferred_element_type=f32) + b3                     # cols 0:2
    pred = jnp.dot(mx.astype(jnp.bfloat16), wsmall_ref[3 * NH:4 * NH, :],
                   preferred_element_type=f32) + bp                   # cols 0:2 main, 2:4 aux

    # softmax over 2 classes == sigmoid of the difference
    gate0 = jax.nn.sigmoid(gl[:, 0:1] - gl[:, 1:2])
    gate1 = 1.0 - gate0

    out_ref[...] = pred                                               # cols 2:4 = aux logits
    out_ref[:, 0:C] = pred[:, 0:C] * gate0 + pred[:, C:2 * C] * gate1 # cols 0:2 = main out


# ---- parameter construction (torch-shaped) -----------------------------------
def _lstm_dir_params(key, in_dim, hidden):
    k1, k2, k3, k4 = jax.random.split(key, 4)
    s = 1.0 / jnp.sqrt(hidden)
    w_ih = jax.random.uniform(k1, (4 * hidden, in_dim), jnp.float32, -s, s)
    w_hh = jax.random.uniform(k2, (4 * hidden, hidden), jnp.float32, -s, s)
    b_ih = jax.random.uniform(k3, (4 * hidden,), jnp.float32, -s, s)
    b_hh = jax.random.uniform(k4, (4 * hidden,), jnp.float32, -s, s)
    return w_ih, w_hh, b_ih, b_hh


def _linear_params(key, in_dim, out_dim):
    k1, k2 = jax.random.split(key)
    s = 1.0 / jnp.sqrt(in_dim)
    w = jax.random.uniform(k1, (out_dim, in_dim), jnp.float32, -s, s)
    b = jax.random.uniform(k2, (out_dim,), jnp.float32, -s, s)
    return w, b


def init_params(key):
    keys = jax.random.split(key, 11)
    p = {}
    p['embedding'] = jax.random.normal(keys[0], (VOCAB + 1, TEXT_DIM), jnp.float32)
    p['aux_fwd'] = _lstm_dir_params(keys[1], TEXT_DIM, HIDDEN)
    p['aux_bwd'] = _lstm_dir_params(keys[2], TEXT_DIM, HIDDEN)
    p['main_fwd'] = _lstm_dir_params(keys[3], TEXT_DIM, HIDDEN)
    p['main_bwd'] = _lstm_dir_params(keys[4], TEXT_DIM, HIDDEN)
    p['aux_pred'] = _linear_params(keys[5], 2 * HIDDEN, CLASS_NUM)
    p['main_pred'] = _linear_params(keys[6], 2 * HIDDEN, CLASS_NUM)
    p['gate1'] = _linear_params(keys[7], TEXT_DIM, TEXT_DIM)
    p['gate2'] = _linear_params(keys[8], TEXT_DIM, TEXT_DIM)
    p['gate3'] = _linear_params(keys[9], TEXT_DIM, 2)
    return p


# ---- host-side packing into a few lane-dense bf16 slabs ----------------------
def pack_params(p):
    H, D, C = HIDDEN, TEXT_DIM, CLASS_NUM
    # direction order: 0=aux_fwd, 1=main_fwd, 2=aux_bwd, 3=main_bwd
    dirs = [p['aux_fwd'], p['main_fwd'], p['aux_bwd'], p['main_bwd']]

    # Gate column layout: col = g*NH + d*H + j (gate-type major, 128-lane aligned).
    # The 0.5 pre-scale of the i/f/o gates (sigmoid(x)=0.5*tanh(x/2)+0.5) is
    # folded into the weights and biases here.
    w_ih = jnp.zeros((NH, NG), jnp.float32)   # rows 0:D weights, row D = combined bias
    w_hh = jnp.zeros((NH, NG), jnp.float32)   # block-diagonal recurrent weights
    for d, (wi, wh, bi, bh) in enumerate(dirs):
        for g in range(4):                    # torch gate order i, f, g, o
            sc = 1.0 if g == 2 else 0.5
            c0 = g * NH + d * H
            w_ih = w_ih.at[0:D, c0:c0 + H].set(sc * wi[g * H:(g + 1) * H, :].T)
            w_ih = w_ih.at[D, c0:c0 + H].set(
                sc * (bi[g * H:(g + 1) * H] + bh[g * H:(g + 1) * H]))
            w_hh = w_hh.at[d * H:(d + 1) * H, c0:c0 + H].set(
                sc * wh[g * H:(g + 1) * H, :].T)

    # Tail slab: rows 0:128 G1, 128:256 G2, 256:384 G3, 384:512 WPRED, 512:528 biases.
    g1w, g1b = p['gate1']
    g2w, g2b = p['gate2']
    g3w, g3b = p['gate3']
    wm, bm = p['main_pred']
    wa, ba = p['aux_pred']
    ws = jnp.zeros((WS_ROWS, NH), jnp.float32)
    ws = ws.at[0:D, 0:D].set(g1w.T)
    ws = ws.at[NH:NH + D, 0:D].set(g2w.T)
    ws = ws.at[2 * NH:2 * NH + D, 0:C].set(g3w.T)
    # WPRED: main logits in cols 0:C, aux logits in cols C:2C; hidden-lane blocks
    ws = ws.at[3 * NH + 1 * H:3 * NH + 2 * H, 0:C].set(wm[:, 0:H].T)        # main_fwd
    ws = ws.at[3 * NH + 3 * H:3 * NH + 4 * H, 0:C].set(wm[:, H:2 * H].T)    # main_bwd
    ws = ws.at[3 * NH + 0 * H:3 * NH + 1 * H, C:2 * C].set(wa[:, 0:H].T)    # aux_fwd
    ws = ws.at[3 * NH + 2 * H:3 * NH + 3 * H, C:2 * C].set(wa[:, H:2 * H].T)  # aux_bwd
    ws = ws.at[4 * NH + 0, 0:D].set(g1b)
    ws = ws.at[4 * NH + 1, 0:D].set(g2b)
    ws = ws.at[4 * NH + 2, 0:C].set(g3b)
    ws = ws.at[4 * NH + 3, 0:C].set(bm)
    ws = ws.at[4 * NH + 3, C:2 * C].set(ba)

    return dict(
        embedding=p['embedding'],
        w_ih=w_ih.astype(jnp.bfloat16),
        w_hh=w_hh.astype(jnp.bfloat16),
        w_small=ws.astype(jnp.bfloat16))


# ---- wrapper -----------------------------------------------------------------
def forward(packed, text_inputs, text_length):
    B, S = text_inputs.shape
    ids = jnp.zeros((BPAD, S), jnp.int32).at[:B, :].set(text_inputs.astype(jnp.int32))
    lens = jnp.zeros((BPAD,), jnp.int32).at[:B].set(text_length.astype(jnp.int32))

    # embedding gather stays in XLA (trivial); time-major, padded to 128 lanes;
    # column TEXT_DIM holds a constant 1.0 so the gate bias rides in w_ih.
    emb = jnp.take(packed['embedding'], ids, axis=0)                  # (BPAD,S,D)
    emb_tm = jnp.transpose(emb, (1, 0, 2)).reshape(S * BPAD, TEXT_DIM)
    emb_pad = jnp.concatenate(
        [emb_tm,
         jnp.ones((S * BPAD, 1), jnp.float32),
         jnp.zeros((S * BPAD, NH - TEXT_DIM - 1), jnp.float32)], axis=1)

    # per-step, per-lane validity mask: fwd lanes (0:64) check position t,
    # bwd lanes (64:128) check position S-1-t
    t_idx = jnp.arange(S, dtype=jnp.int32)
    fwd_ok = (t_idx[:, None] < lens[None, :]).astype(jnp.float32)     # (S, BPAD)
    bwd_ok = ((S - 1 - t_idx)[:, None] < lens[None, :]).astype(jnp.float32)
    is_fwd = (jnp.arange(NH) < (NH // 2)).astype(jnp.float32)         # (128,)
    mask = fwd_ok[:, :, None] * is_fwd + bwd_ok[:, :, None] * (1.0 - is_fwd)
    mask = mask.reshape(S * BPAD, NH)

    data = jnp.concatenate([mask, emb_pad], axis=0).astype(jnp.float32)  # (128,128)

    vmem = pl.BlockSpec(memory_space=pltpu.MemorySpace.VMEM)
    out = pl.pallas_call(
        _model_kernel,
        out_shape=jax.ShapeDtypeStruct((BPAD, NH), jnp.float32),
        in_specs=[vmem, vmem, vmem, vmem],
        out_specs=vmem,
        scratch_shapes=[pltpu.VMEM((S * BPAD, NG), jnp.float32)],
    )(data, packed['w_ih'], packed['w_hh'], packed['w_small'])

    main_out = out[:B, 0:CLASS_NUM]
    aux_logits = out[:B, CLASS_NUM:2 * CLASS_NUM]
    return main_out, aux_logits


# ---- pure-JAX reference (same semantics, un-fused) for a sanity check --------
def _reference_forward(params, text_inputs, text_length):
    emb = jnp.take(params['embedding'], text_inputs, axis=0)          # (B, S, D)
    mask = (jnp.arange(SEQ)[None, :] < text_length[:, None]).astype(jnp.float32)

    def lstm_dir(w_ih, w_hh, b_ih, b_hh, reverse):
        b = (b_ih + b_hh)[None, :]
        wih_t, whh_t = w_ih.T, w_hh.T
        h = jnp.zeros((BATCH, HIDDEN), jnp.float32)
        c = jnp.zeros((BATCH, HIDDEN), jnp.float32)
        mx = jnp.full((BATCH, HIDDEN), -jnp.inf, jnp.float32)
        for t in range(SEQ):
            idx = SEQ - 1 - t if reverse else t
            x_t = emb[:, idx, :]
            m_t = mask[:, idx][:, None]
            gates = x_t @ wih_t + h @ whh_t + b
            i_g = jax.nn.sigmoid(gates[:, 0:HIDDEN])
            f_g = jax.nn.sigmoid(gates[:, HIDDEN:2 * HIDDEN])
            g_g = jnp.tanh(gates[:, 2 * HIDDEN:3 * HIDDEN])
            o_g = jax.nn.sigmoid(gates[:, 3 * HIDDEN:4 * HIDDEN])
            c_new = f_g * c + i_g * g_g
            h_new = o_g * jnp.tanh(c_new)
            h = m_t * h_new + (1.0 - m_t) * h
            c = m_t * c_new + (1.0 - m_t) * c
            mx = jnp.maximum(mx, m_t * h_new - 10000.0 * (1.0 - m_t))
        return mx

    aux_pool = jnp.concatenate([lstm_dir(*params['aux_fwd'], reverse=False),
                                lstm_dir(*params['aux_bwd'], reverse=True)], axis=1)
    wa, ba = params['aux_pred']
    aux_logits = aux_pool @ wa.T + ba
    main_pool = jnp.concatenate([lstm_dir(*params['main_fwd'], reverse=False),
                                 lstm_dir(*params['main_bwd'], reverse=True)], axis=1)
    wm, bm = params['main_pred']
    logits = main_pool @ wm.T + bm

    emb_max = jnp.max(emb, axis=1)
    w1, b1 = params['gate1']
    w2, b2 = params['gate2']
    w3, b3 = params['gate3']
    h1 = jax.nn.relu(emb_max @ w1.T + b1)
    h2 = jax.nn.relu(h1 @ w2.T + b2)
    gate = jax.nn.softmax(h2 @ w3.T + b3, axis=1)
    main_out = logits * gate[:, 0:1] + aux_logits * gate[:, 1:2]
    return main_out, aux_logits


if __name__ == "__main__":
    key = jax.random.PRNGKey(0)
    pkey, dkey = jax.random.split(key)
    params = init_params(pkey)
    packed = pack_params(params)

    text_inputs = jax.random.randint(dkey, (BATCH, SEQ), 1, VOCAB + 1, jnp.int32)
    text_length = jnp.array([SEQ, 5], dtype=jnp.int32)

    main_out, aux_logits = jax.jit(forward)(packed, text_inputs, text_length)
    jax.block_until_ready((main_out, aux_logits))

    # correctness sanity check vs. an un-fused pure-JAX f32 reference
    ref_main, ref_aux = jax.jit(_reference_forward)(params, text_inputs, text_length)
    jax.block_until_ready((ref_main, ref_aux))

    assert main_out.shape == (BATCH, CLASS_NUM)
    assert aux_logits.shape == (BATCH, CLASS_NUM)
    assert bool(jnp.all(jnp.isfinite(main_out))) and bool(jnp.all(jnp.isfinite(aux_logits)))
    assert bool(jnp.allclose(main_out, ref_main, atol=3e-2, rtol=3e-2))
    assert bool(jnp.allclose(aux_logits, ref_aux, atol=3e-2, rtol=3e-2))
    print("KERNEL_OK")
</pallas_src>

<mosaic_0001>
module attributes {stable_mosaic.version = 11 : i64} {
  func.func @_model_kernel(%arg0: memref<128x128xf32, #tpu.memory_space<vmem>>, %arg1: memref<128x512xbf16, #tpu.memory_space<vmem>>, %arg2: memref<128x512xbf16, #tpu.memory_space<vmem>>, %arg3: memref<528x128xbf16, #tpu.memory_space<vmem>>, %arg4: memref<8x128xf32, #tpu.memory_space<vmem>>, %arg5: memref<64x512xf32, #tpu.memory_space<vmem>>) attributes {dimension_semantics = [], scalar_prefetch = 0 : i64, scratch_operands = 1 : i64, tpu.core_type = #tpu.core_type<tc>} {
    %0 = tpu.iota {dimensions = array<i32: 1>} : vector<8x512xi32>
    %c7_i32 = arith.constant 7 : i32
    %1 = vector.broadcast %c7_i32 : i32 to vector<8x512xi32>
    %2 = arith.shrsi %0, %1 : vector<8x512xi32>
    %c2_i32 = arith.constant 2 : i32
    %3 = vector.broadcast %c2_i32 : i32 to vector<8x512xi32>
    %4 = arith.cmpi eq, %2, %3 : vector<8x512xi32>
    %cst = arith.constant 1.000000e+00 : f32
    %cst_0 = arith.constant 5.000000e-01 : f32
    %5 = vector.broadcast %cst : f32 to vector<8x512xf32>
    %6 = vector.broadcast %cst_0 : f32 to vector<8x512xf32>
    %7 = arith.select %4, %5, %6 : vector<8x512xi1>, vector<8x512xf32>
    %cst_1 = arith.constant 0.000000e+00 : f32
    %cst_2 = arith.constant 5.000000e-01 : f32
    %8 = vector.broadcast %cst_1 : f32 to vector<8x512xf32>
    %9 = vector.broadcast %cst_2 : f32 to vector<8x512xf32>
    %10 = arith.select %4, %8, %9 : vector<8x512xi1>, vector<8x512xf32>
    %c127_i32 = arith.constant 127 : i32
    %11 = vector.broadcast %c127_i32 : i32 to vector<8x512xi32>
    %12 = arith.andi %0, %11 : vector<8x512xi32>
    %c64_i32 = arith.constant 64 : i32
    %13 = vector.broadcast %c64_i32 : i32 to vector<8x512xi32>
    %14 = arith.cmpi slt, %12, %13 : vector<8x512xi32>
    %c64 = arith.constant 64 : index
    %c0 = arith.constant 0 : index
    %15 = vector.load %arg0[%c64, %c0] : memref<128x128xf32, #tpu.memory_space<vmem>>, vector<64x128xf32>
    %16 = arith.truncf %15 : vector<64x128xf32> to vector<64x128xbf16>
    %c0_3 = arith.constant 0 : index
    %c0_4 = arith.constant 0 : index
    %17 = vector.load %arg1[%c0_3, %c0_4] : memref<128x512xbf16, #tpu.memory_space<vmem>>, vector<128x512xbf16>
    %cst_5 = arith.constant dense<0.000000e+00> : vector<64x512xf32>
    %18 = tpu.matmul %16, %17, %cst_5 {dimension_numbers = #tpu.dot_dimension_numbers<[1], [0], [0], [1], [0, 0, 1, 1], [], []>} : vector<64x128xbf16>, vector<128x512xbf16>, vector<64x512xf32> -> vector<64x512xf32>
    %19 = vector.extract_strided_slice %18 {offsets = [0, 0], sizes = [8, 512], strides = [1, 1]} : vector<64x512xf32> to vector<8x512xf32>
    %20 = vector.extract_strided_slice %18 {offsets = [56, 0], sizes = [8, 512], strides = [1, 1]} : vector<64x512xf32> to vector<8x512xf32>
    %21 = arith.select %14, %19, %20 : vector<8x512xi1>, vector<8x512xf32>
    %c0_6 = arith.constant 0 : index
    %c0_7 = arith.constant 0 : index
    %22 = vector.load %arg5[%c0_6, %c0_7] : memref<64x512xf32, #tpu.memory_space<vmem>>, vector<8x512xf32>
    tpu.vector_store %arg5[%c0_6, %c0_7], %21 {strides = array<i32>} : memref<64x512xf32, #tpu.memory_space<vmem>>, vector<8x512xf32>,
    %23 = vector.extract_strided_slice %18 {offsets = [8, 0], sizes = [8, 512], strides = [1, 1]} : vector<64x512xf32> to vector<8x512xf32>
    %24 = vector.extract_strided_slice %18 {offsets = [48, 0], sizes = [8, 512], strides = [1, 1]} : vector<64x512xf32> to vector<8x512xf32>
    %25 = arith.select %14, %23, %24 : vector<8x512xi1>, vector<8x512xf32>
    %c8 = arith.constant 8 : index
    %c0_8 = arith.constant 0 : index
    %26 = vector.load %arg5[%c8, %c0_8] : memref<64x512xf32, #tpu.memory_space<vmem>>, vector<8x512xf32>
    tpu.vector_store %arg5[%c8, %c0_8], %25 {strides = array<i32>} : memref<64x512xf32, #tpu.memory_space<vmem>>, vector<8x512xf32>,
    %27 = vector.extract_strided_slice %18 {offsets = [16, 0], sizes = [8, 512], strides = [1, 1]} : vector<64x512xf32> to vector<8x512xf32>
    %28 = vector.extract_strided_slice %18 {offsets = [40, 0], sizes = [8, 512], strides = [1, 1]} : vector<64x512xf32> to vector<8x512xf32>
    %29 = arith.select %14, %27, %28 : vector<8x512xi1>, vector<8x512xf32>
    %c16 = arith.constant 16 : index
    %c0_9 = arith.constant 0 : index
    %30 = vector.load %arg5[%c16, %c0_9] : memref<64x512xf32, #tpu.memory_space<vmem>>, vector<8x512xf32>
    tpu.vector_store %arg5[%c16, %c0_9], %29 {strides = array<i32>} : memref<64x512xf32, #tpu.memory_space<vmem>>, vector<8x512xf32>,
    %31 = vector.extract_strided_slice %18 {offsets = [24, 0], sizes = [8, 512], strides = [1, 1]} : vector<64x512xf32> to vector<8x512xf32>
    %32 = vector.extract_strided_slice %18 {offsets = [32, 0], sizes = [8, 512], strides = [1, 1]} : vector<64x512xf32> to vector<8x512xf32>
    %33 = arith.select %14, %31, %32 : vector<8x512xi1>, vector<8x512xf32>
    %c24 = arith.constant 24 : index
    %c0_10 = arith.constant 0 : index
    %34 = vector.load %arg5[%c24, %c0_10] : memref<64x512xf32, #tpu.memory_space<vmem>>, vector<8x512xf32>
    tpu.vector_store %arg5[%c24, %c0_10], %33 {strides = array<i32>} : memref<64x512xf32, #tpu.memory_space<vmem>>, vector<8x512xf32>,
    %35 = vector.extract_strided_slice %18 {offsets = [32, 0], sizes = [8, 512], strides = [1, 1]} : vector<64x512xf32> to vector<8x512xf32>
    %36 = vector.extract_strided_slice %18 {offsets = [24, 0], sizes = [8, 512], strides = [1, 1]} : vector<64x512xf32> to vector<8x512xf32>
    %37 = arith.select %14, %35, %36 : vector<8x512xi1>, vector<8x512xf32>
    %c32 = arith.constant 32 : index
    %c0_11 = arith.constant 0 : index
    %38 = vector.load %arg5[%c32, %c0_11] : memref<64x512xf32, #tpu.memory_space<vmem>>, vector<8x512xf32>
    tpu.vector_store %arg5[%c32, %c0_11], %37 {strides = array<i32>} : memref<64x512xf32, #tpu.memory_space<vmem>>, vector<8x512xf32>,
    %39 = vector.extract_strided_slice %18 {offsets = [40, 0], sizes = [8, 512], strides = [1, 1]} : vector<64x512xf32> to vector<8x512xf32>
    %40 = vector.extract_strided_slice %18 {offsets = [16, 0], sizes = [8, 512], strides = [1, 1]} : vector<64x512xf32> to vector<8x512xf32>
    %41 = arith.select %14, %39, %40 : vector<8x512xi1>, vector<8x512xf32>
    %c40 = arith.constant 40 : index
    %c0_12 = arith.constant 0 : index
    %42 = vector.load %arg5[%c40, %c0_12] : memref<64x512xf32, #tpu.memory_space<vmem>>, vector<8x512xf32>
    tpu.vector_store %arg5[%c40, %c0_12], %41 {strides = array<i32>} : memref<64x512xf32, #tpu.memory_space<vmem>>, vector<8x512xf32>,
    %43 = vector.extract_strided_slice %18 {offsets = [48, 0], sizes = [8, 512], strides = [1, 1]} : vector<64x512xf32> to vector<8x512xf32>
    %44 = vector.extract_strided_slice %18 {offsets = [8, 0], sizes = [8, 512], strides = [1, 1]} : vector<64x512xf32> to vector<8x512xf32>
    %45 = arith.select %14, %43, %44 : vector<8x512xi1>, vector<8x512xf32>
    %c48 = arith.constant 48 : index
    %c0_13 = arith.constant 0 : index
    %46 = vector.load %arg5[%c48, %c0_13] : memref<64x512xf32, #tpu.memory_space<vmem>>, vector<8x512xf32>
    tpu.vector_store %arg5[%c48, %c0_13], %45 {strides = array<i32>} : memref<64x512xf32, #tpu.memory_space<vmem>>, vector<8x512xf32>,
    %47 = vector.extract_strided_slice %18 {offsets = [56, 0], sizes = [8, 512], strides = [1, 1]} : vector<64x512xf32> to vector<8x512xf32>
    %48 = vector.extract_strided_slice %18 {offsets = [0, 0], sizes = [8, 512], strides = [1, 1]} : vector<64x512xf32> to vector<8x512xf32>
    %49 = arith.select %14, %47, %48 : vector<8x512xi1>, vector<8x512xf32>
    %c56 = arith.constant 56 : index
    %c0_14 = arith.constant 0 : index
    %50 = vector.load %arg5[%c56, %c0_14] : memref<64x512xf32, #tpu.memory_space<vmem>>, vector<8x512xf32>
    tpu.vector_store %arg5[%c56, %c0_14], %49 {strides = array<i32>} : memref<64x512xf32, #tpu.memory_space<vmem>>, vector<8x512xf32>,
    %cst_15 = arith.constant 0.000000e+00 : f32
    %51 = vector.broadcast %cst_15 : f32 to vector<8x128xf32>
    %cst_16 = arith.constant 0.000000e+00 : f32
    %52 = vector.broadcast %cst_16 : f32 to vector<8x128xf32>
    %cst_17 = arith.constant -1.000000e+04 : f32
    %53 = vector.broadcast %cst_17 : f32 to vector<8x128xf32>
    %c0_18 = arith.constant 0 : index
    %c0_19 = arith.constant 0 : index
    %54 = vector.load %arg5[%c0_18, %c0_19] : memref<64x512xf32, #tpu.memory_space<vmem>>, vector<8x512xf32>
    %55 = arith.truncf %51 : vector<8x128xf32> to vector<8x128xbf16>
    %c0_20 = arith.constant 0 : index
    %c0_21 = arith.constant 0 : index
    %56 = vector.load %arg2[%c0_20, %c0_21] : memref<128x512xbf16, #tpu.memory_space<vmem>>, vector<128x512xbf16>
    %cst_22 = arith.constant dense<0.000000e+00> : vector<8x512xf32>
    %57 = tpu.matmul %55, %56, %cst_22 {dimension_numbers = #tpu.dot_dimension_numbers<[1], [0], [0], [1], [0, 0, 1, 1], [], []>} : vector<8x128xbf16>, vector<128x512xbf16>, vector<8x512xf32> -> vector<8x512xf32>
    %58 = arith.addf %54, %57 : vector<8x512xf32>
    %59 = math.tanh %58 : vector<8x512xf32>
    %60 = arith.mulf %59, %7 : vector<8x512xf32>
    %61 = arith.addf %60, %10 : vector<8x512xf32>
    %62 = vector.extract_strided_slice %61 {offsets = [0, 0], sizes = [8, 128], strides = [1, 1]} : vector<8x512xf32> to vector<8x128xf32>
    %63 = vector.extract_strided_slice %61 {offsets = [0, 128], sizes = [8, 128], strides = [1, 1]} : vector<8x512xf32> to vector<8x128xf32>
    %64 = vector.extract_strided_slice %61 {offsets = [0, 256], sizes = [8, 128], strides = [1, 1]} : vector<8x512xf32> to vector<8x128xf32>
    %65 = vector.extract_strided_slice %61 {offsets = [0, 384], sizes = [8, 128], strides = [1, 1]} : vector<8x512xf32> to vector<8x128xf32>
    %66 = arith.mulf %63, %52 : vector<8x128xf32>
    %67 = arith.mulf %62, %64 : vector<8x128xf32>
    %68 = arith.addf %66, %67 : vector<8x128xf32>
    %69 = math.tanh %68 : vector<8x128xf32>
    %70 = arith.mulf %65, %69 : vector<8x128xf32>
    %c0_23 = arith.constant 0 : index
    %c0_24 = arith.constant 0 : index
    %71 = vector.load %arg0[%c0_23, %c0_24] : memref<128x128xf32, #tpu.memory_space<vmem>>, vector<8x128xf32>
    %cst_25 = arith.constant 5.000000e-01 : f32
    %72 = vector.broadcast %cst_25 : f32 to vector<8x128xf32>
    %73 = arith.cmpf ogt, %71, %72 : vector<8x128xf32>
    %74 = arith.select %73, %70, %51 : vector<8x128xi1>, vector<8x128xf32>
    %75 = arith.select %73, %68, %52 : vector<8x128xi1>, vector<8x128xf32>
    %cst_26 = arith.constant -1.000000e+04 : f32
    %76 = vector.broadcast %cst_26 : f32 to vector<8x128xf32>
    %77 = arith.select %73, %70, %76 : vector<8x128xi1>, vector<8x128xf32>
    %78 = arith.maximumf %53, %77 : vector<8x128xf32>
    %c8_27 = arith.constant 8 : index
    %c0_28 = arith.constant 0 : index
    %79 = vector.load %arg5[%c8_27, %c0_28] : memref<64x512xf32, #tpu.memory_space<vmem>>, vector<8x512xf32>
    %80 = arith.truncf %74 : vector<8x128xf32> to vector<8x128xbf16>
    %c0_29 = arith.constant 0 : index
    %c0_30 = arith.constant 0 : index
    %81 = vector.load %arg2[%c0_29, %c0_30] : memref<128x512xbf16, #tpu.memory_space<vmem>>, vector<128x512xbf16>
    %cst_31 = arith.constant dense<0.000000e+00> : vector<8x512xf32>
    %82 = tpu.matmul %80, %81, %cst_31 {dimension_numbers = #tpu.dot_dimension_numbers<[1], [0], [0], [1], [0, 0, 1, 1], [], []>} : vector<8x128xbf16>, vector<128x512xbf16>, vector<8x512xf32> -> vector<8x512xf32>
    %83 = arith.addf %79, %82 : vector<8x512xf32>
    %84 = math.tanh %83 : vector<8x512xf32>
    %85 = arith.mulf %84, %7 : vector<8x512xf32>
    %86 = arith.addf %85, %10 : vector<8x512xf32>
    %87 = vector.extract_strided_slice %86 {offsets = [0, 0], sizes = [8, 128], strides = [1, 1]} : vector<8x512xf32> to vector<8x128xf32>
    %88 = vector.extract_strided_slice %86 {offsets = [0, 128], sizes = [8, 128], strides = [1, 1]} : vector<8x512xf32> to vector<8x128xf32>
    %89 = vector.extract_strided_slice %86 {offsets = [0, 256], sizes = [8, 128], strides = [1, 1]} : vector<8x512xf32> to vector<8x128xf32>
    %90 = vector.extract_strided_slice %86 {offsets = [0, 384], sizes = [8, 128], strides = [1, 1]} : vector<8x512xf32> to vector<8x128xf32>
    %91 = arith.mulf %88, %75 : vector<8x128xf32>
    %92 = arith.mulf %87, %89 : vector<8x128xf32>
    %93 = arith.addf %91, %92 : vector<8x128xf32>
    %94 = math.tanh %93 : vector<8x128xf32>
    %95 = arith.mulf %90, %94 : vector<8x128xf32>
    %c8_32 = arith.constant 8 : index
    %c0_33 = arith.constant 0 : index
    %96 = vector.load %arg0[%c8_32, %c0_33] : memref<128x128xf32, #tpu.memory_space<vmem>>, vector<8x128xf32>
    %cst_34 = arith.constant 5.000000e-01 : f32
    %97 = vector.broadcast %cst_34 : f32 to vector<8x128xf32>
    %98 = arith.cmpf ogt, %96, %97 : vector<8x128xf32>
    %99 = arith.select %98, %95, %74 : vector<8x128xi1>, vector<8x128xf32>
    %100 = arith.select %98, %93, %75 : vector<8x128xi1>, vector<8x128xf32>
    %cst_35 = arith.constant -1.000000e+04 : f32
    %101 = vector.broadcast %cst_35 : f32 to vector<8x128xf32>
    %102 = arith.select %98, %95, %101 : vector<8x128xi1>, vector<8x128xf32>
    %103 = arith.maximumf %78, %102 : vector<8x128xf32>
    %c16_36 = arith.constant 16 : index
    %c0_37 = arith.constant 0 : index
    %104 = vector.load %arg5[%c16_36, %c0_37] : memref<64x512xf32, #tpu.memory_space<vmem>>, vector<8x512xf32>
    %105 = arith.truncf %99 : vector<8x128xf32> to vector<8x128xbf16>
    %c0_38 = arith.constant 0 : index
    %c0_39 = arith.constant 0 : index
    %106 = vector.load %arg2[%c0_38, %c0_39] : memref<128x512xbf16, #tpu.memory_space<vmem>>, vector<128x512xbf16>
    %cst_40 = arith.constant dense<0.000000e+00> : vector<8x512xf32>
    %107 = tpu.matmul %105, %106, %cst_40 {dimension_numbers = #tpu.dot_dimension_numbers<[1], [0], [0], [1], [0, 0, 1, 1], [], []>} : vector<8x128xbf16>, vector<128x512xbf16>, vector<8x512xf32> -> vector<8x512xf32>
    %108 = arith.addf %104, %107 : vector<8x512xf32>
    %109 = math.tanh %108 : vector<8x512xf32>
    %110 = arith.mulf %109, %7 : vector<8x512xf32>
    %111 = arith.addf %110, %10 : vector<8x512xf32>
    %112 = vector.extract_strided_slice %111 {offsets = [0, 0], sizes = [8, 128], strides = [1, 1]} : vector<8x512xf32> to vector<8x128xf32>
    %113 = vector.extract_strided_slice %111 {offsets = [0, 128], sizes = [8, 128], strides = [1, 1]} : vector<8x512xf32> to vector<8x128xf32>
    %114 = vector.extract_strided_slice %111 {offsets = [0, 256], sizes = [8, 128], strides = [1, 1]} : vector<8x512xf32> to vector<8x128xf32>
    %115 = vector.extract_strided_slice %111 {offsets = [0, 384], sizes = [8, 128], strides = [1, 1]} : vector<8x512xf32> to vector<8x128xf32>
    %116 = arith.mulf %113, %100 : vector<8x128xf32>
    %117 = arith.mulf %112, %114 : vector<8x128xf32>
    %118 = arith.addf %116, %117 : vector<8x128xf32>
    %119 = math.tanh %118 : vector<8x128xf32>
    %120 = arith.mulf %115, %119 : vector<8x128xf32>
    %c16_41 = arith.constant 16 : index
    %c0_42 = arith.constant 0 : index
    %121 = vector.load %arg0[%c16_41, %c0_42] : memref<128x128xf32, #tpu.memory_space<vmem>>, vector<8x128xf32>
    %cst_43 = arith.constant 5.000000e-01 : f32
    %122 = vector.broadcast %cst_43 : f32 to vector<8x128xf32>
    %123 = arith.cmpf ogt, %121, %122 : vector<8x128xf32>
    %124 = arith.select %123, %120, %99 : vector<8x128xi1>, vector<8x128xf32>
    %125 = arith.select %123, %118, %100 : vector<8x128xi1>, vector<8x128xf32>
    %cst_44 = arith.constant -1.000000e+04 : f32
    %126 = vector.broadcast %cst_44 : f32 to vector<8x128xf32>
    %127 = arith.select %123, %120, %126 : vector<8x128xi1>, vector<8x128xf32>
    %128 = arith.maximumf %103, %127 : vector<8x128xf32>
    %c24_45 = arith.constant 24 : index
    %c0_46 = arith.constant 0 : index
    %129 = vector.load %arg5[%c24_45, %c0_46] : memref<64x512xf32, #tpu.memory_space<vmem>>, vector<8x512xf32>
    %130 = arith.truncf %124 : vector<8x128xf32> to vector<8x128xbf16>
    %c0_47 = arith.constant 0 : index
    %c0_48 = arith.constant 0 : index
    %131 = vector.load %arg2[%c0_47, %c0_48] : memref<128x512xbf16, #tpu.memory_space<vmem>>, vector<128x512xbf16>
    %cst_49 = arith.constant dense<0.000000e+00> : vector<8x512xf32>
    %132 = tpu.matmul %130, %131, %cst_49 {dimension_numbers = #tpu.dot_dimension_numbers<[1], [0], [0], [1], [0, 0, 1, 1], [], []>} : vector<8x128xbf16>, vector<128x512xbf16>, vector<8x512xf32> -> vector<8x512xf32>
    %133 = arith.addf %129, %132 : vector<8x512xf32>
    %134 = math.tanh %133 : vector<8x512xf32>
    %135 = arith.mulf %134, %7 : vector<8x512xf32>
    %136 = arith.addf %135, %10 : vector<8x512xf32>
    %137 = vector.extract_strided_slice %136 {offsets = [0, 0], sizes = [8, 128], strides = [1, 1]} : vector<8x512xf32> to vector<8x128xf32>
    %138 = vector.extract_strided_slice %136 {offsets = [0, 128], sizes = [8, 128], strides = [1, 1]} : vector<8x512xf32> to vector<8x128xf32>
    %139 = vector.extract_strided_slice %136 {offsets = [0, 256], sizes = [8, 128], strides = [1, 1]} : vector<8x512xf32> to vector<8x128xf32>
    %140 = vector.extract_strided_slice %136 {offsets = [0, 384], sizes = [8, 128], strides = [1, 1]} : vector<8x512xf32> to vector<8x128xf32>
    %141 = arith.mulf %138, %125 : vector<8x128xf32>
    %142 = arith.mulf %137, %139 : vector<8x128xf32>
    %143 = arith.addf %141, %142 : vector<8x128xf32>
    %144 = math.tanh %143 : vector<8x128xf32>
    %145 = arith.mulf %140, %144 : vector<8x128xf32>
    %c24_50 = arith.constant 24 : index
    %c0_51 = arith.constant 0 : index
    %146 = vector.load %arg0[%c24_50, %c0_51] : memref<128x128xf32, #tpu.memory_space<vmem>>, vector<8x128xf32>
    %cst_52 = arith.constant 5.000000e-01 : f32
    %147 = vector.broadcast %cst_52 : f32 to vector<8x128xf32>
    %148 = arith.cmpf ogt, %146, %147 : vector<8x128xf32>
    %149 = arith.select %148, %145, %124 : vector<8x128xi1>, vector<8x128xf32>
    %150 = arith.select %148, %143, %125 : vector<8x128xi1>, vector<8x128xf32>
    %cst_53 = arith.constant -1.000000e+04 : f32
    %151 = vector.broadcast %cst_53 : f32 to vector<8x128xf32>
    %152 = arith.select %148, %145, %151 : vector<8x128xi1>, vector<8x128xf32>
    %153 = arith.maximumf %128, %152 : vector<8x128xf32>
    %c32_54 = arith.constant 32 : index
    %c0_55 = arith.constant 0 : index
    %154 = vector.load %arg5[%c32_54, %c0_55] : memref<64x512xf32, #tpu.memory_space<vmem>>, vector<8x512xf32>
    %155 = arith.truncf %149 : vector<8x128xf32> to vector<8x128xbf16>
    %c0_56 = arith.constant 0 : index
    %c0_57 = arith.constant 0 : index
    %156 = vector.load %arg2[%c0_56, %c0_57] : memref<128x512xbf16, #tpu.memory_space<vmem>>, vector<128x512xbf16>
    %cst_58 = arith.constant dense<0.000000e+00> : vector<8x512xf32>
    %157 = tpu.matmul %155, %156, %cst_58 {dimension_numbers = #tpu.dot_dimension_numbers<[1], [0], [0], [1], [0, 0, 1, 1], [], []>} : vector<8x128xbf16>, vector<128x512xbf16>, vector<8x512xf32> -> vector<8x512xf32>
    %158 = arith.addf %154, %157 : vector<8x512xf32>
    %159 = math.tanh %158 : vector<8x512xf32>
    %160 = arith.mulf %159, %7 : vector<8x512xf32>
    %161 = arith.addf %160, %10 : vector<8x512xf32>
    %162 = vector.extract_strided_slice %161 {offsets = [0, 0], sizes = [8, 128], strides = [1, 1]} : vector<8x512xf32> to vector<8x128xf32>
    %163 = vector.extract_strided_slice %161 {offsets = [0, 128], sizes = [8, 128], strides = [1, 1]} : vector<8x512xf32> to vector<8x128xf32>
    %164 = vector.extract_strided_slice %161 {offsets = [0, 256], sizes = [8, 128], strides = [1, 1]} : vector<8x512xf32> to vector<8x128xf32>
    %165 = vector.extract_strided_slice %161 {offsets = [0, 384], sizes = [8, 128], strides = [1, 1]} : vector<8x512xf32> to vector<8x128xf32>
    %166 = arith.mulf %163, %150 : vector<8x128xf32>
    %167 = arith.mulf %162, %164 : vector<8x128xf32>
    %168 = arith.addf %166, %167 : vector<8x128xf32>
    %169 = math.tanh %168 : vector<8x128xf32>
    %170 = arith.mulf %165, %169 : vector<8x128xf32>
    %c32_59 = arith.constant 32 : index
    %c0_60 = arith.constant 0 : index
    %171 = vector.load %arg0[%c32_59, %c0_60] : memref<128x128xf32, #tpu.memory_space<vmem>>, vector<8x128xf32>
    %cst_61 = arith.constant 5.000000e-01 : f32
    %172 = vector.broadcast %cst_61 : f32 to vector<8x128xf32>
    %173 = arith.cmpf ogt, %171, %172 : vector<8x128xf32>
    %174 = arith.select %173, %170, %149 : vector<8x128xi1>, vector<8x128xf32>
    %175 = arith.select %173, %168, %150 : vector<8x128xi1>, vector<8x128xf32>
    %cst_62 = arith.constant -1.000000e+04 : f32
    %176 = vector.broadcast %cst_62 : f32 to vector<8x128xf32>
    %177 = arith.select %173, %170, %176 : vector<8x128xi1>, vector<8x128xf32>
    %178 = arith.maximumf %153, %177 : vector<8x128xf32>
    %c40_63 = arith.constant 40 : index
    %c0_64 = arith.constant 0 : index
    %179 = vector.load %arg5[%c40_63, %c0_64] : memref<64x512xf32, #tpu.memory_space<vmem>>, vector<8x512xf32>
    %180 = arith.truncf %174 : vector<8x128xf32> to vector<8x128xbf16>
    %c0_65 = arith.constant 0 : index
    %c0_66 = arith.constant 0 : index
    %181 = vector.load %arg2[%c0_65, %c0_66] : memref<128x512xbf16, #tpu.memory_space<vmem>>, vector<128x512xbf16>
    %cst_67 = arith.constant dense<0.000000e+00> : vector<8x512xf32>
    %182 = tpu.matmul %180, %181, %cst_67 {dimension_numbers = #tpu.dot_dimension_numbers<[1], [0], [0], [1], [0, 0, 1, 1], [], []>} : vector<8x128xbf16>, vector<128x512xbf16>, vector<8x512xf32> -> vector<8x512xf32>
    %183 = arith.addf %179, %182 : vector<8x512xf32>
    %184 = math.tanh %183 : vector<8x512xf32>
    %185 = arith.mulf %184, %7 : vector<8x512xf32>
    %186 = arith.addf %185, %10 : vector<8x512xf32>
    %187 = vector.extract_strided_slice %186 {offsets = [0, 0], sizes = [8, 128], strides = [1, 1]} : vector<8x512xf32> to vector<8x128xf32>
    %188 = vector.extract_strided_slice %186 {offsets = [0, 128], sizes = [8, 128], strides = [1, 1]} : vector<8x512xf32> to vector<8x128xf32>
    %189 = vector.extract_strided_slice %186 {offsets = [0, 256], sizes = [8, 128], strides = [1, 1]} : vector<8x512xf32> to vector<8x128xf32>
    %190 = vector.extract_strided_slice %186 {offsets = [0, 384], sizes = [8, 128], strides = [1, 1]} : vector<8x512xf32> to vector<8x128xf32>
    %191 = arith.mulf %188, %175 : vector<8x128xf32>
    %192 = arith.mulf %187, %189 : vector<8x128xf32>
    %193 = arith.addf %191, %192 : vector<8x128xf32>
    %194 = math.tanh %193 : vector<8x128xf32>
    %195 = arith.mulf %190, %194 : vector<8x128xf32>
    %c40_68 = arith.constant 40 : index
    %c0_69 = arith.constant 0 : index
    %196 = vector.load %arg0[%c40_68, %c0_69] : memref<128x128xf32, #tpu.memory_space<vmem>>, vector<8x128xf32>
    %cst_70 = arith.constant 5.000000e-01 : f32
    %197 = vector.broadcast %cst_70 : f32 to vector<8x128xf32>
    %198 = arith.cmpf ogt, %196, %197 : vector<8x128xf32>
    %199 = arith.select %198, %195, %174 : vector<8x128xi1>, vector<8x128xf32>
    %200 = arith.select %198, %193, %175 : vector<8x128xi1>, vector<8x128xf32>
    %cst_71 = arith.constant -1.000000e+04 : f32
    %201 = vector.broadcast %cst_71 : f32 to vector<8x128xf32>
    %202 = arith.select %198, %195, %201 : vector<8x128xi1>, vector<8x128xf32>
    %203 = arith.maximumf %178, %202 : vector<8x128xf32>
    %c48_72 = arith.constant 48 : index
    %c0_73 = arith.constant 0 : index
    %204 = vector.load %arg5[%c48_72, %c0_73] : memref<64x512xf32, #tpu.memory_space<vmem>>, vector<8x512xf32>
    %205 = arith.truncf %199 : vector<8x128xf32> to vector<8x128xbf16>
    %c0_74 = arith.constant 0 : index
    %c0_75 = arith.constant 0 : index
    %206 = vector.load %arg2[%c0_74, %c0_75] : memref<128x512xbf16, #tpu.memory_space<vmem>>, vector<128x512xbf16>
    %cst_76 = arith.constant dense<0.000000e+00> : vector<8x512xf32>
    %207 = tpu.matmul %205, %206, %cst_76 {dimension_numbers = #tpu.dot_dimension_numbers<[1], [0], [0], [1], [0, 0, 1, 1], [], []>} : vector<8x128xbf16>, vector<128x512xbf16>, vector<8x512xf32> -> vector<8x512xf32>
    %208 = arith.addf %204, %207 : vector<8x512xf32>
    %209 = math.tanh %208 : vector<8x512xf32>
    %210 = arith.mulf %209, %7 : vector<8x512xf32>
    %211 = arith.addf %210, %10 : vector<8x512xf32>
    %212 = vector.extract_strided_slice %211 {offsets = [0, 0], sizes = [8, 128], strides = [1, 1]} : vector<8x512xf32> to vector<8x128xf32>
    %213 = vector.extract_strided_slice %211 {offsets = [0, 128], sizes = [8, 128], strides = [1, 1]} : vector<8x512xf32> to vector<8x128xf32>
    %214 = vector.extract_strided_slice %211 {offsets = [0, 256], sizes = [8, 128], strides = [1, 1]} : vector<8x512xf32> to vector<8x128xf32>
    %215 = vector.extract_strided_slice %211 {offsets = [0, 384], sizes = [8, 128], strides = [1, 1]} : vector<8x512xf32> to vector<8x128xf32>
    %216 = arith.mulf %213, %200 : vector<8x128xf32>
    %217 = arith.mulf %212, %214 : vector<8x128xf32>
    %218 = arith.addf %216, %217 : vector<8x128xf32>
    %219 = math.tanh %218 : vector<8x128xf32>
    %220 = arith.mulf %215, %219 : vector<8x128xf32>
    %c48_77 = arith.constant 48 : index
    %c0_78 = arith.constant 0 : index
    %221 = vector.load %arg0[%c48_77, %c0_78] : memref<128x128xf32, #tpu.memory_space<vmem>>, vector<8x128xf32>
    %cst_79 = arith.constant 5.000000e-01 : f32
    %222 = vector.broadcast %cst_79 : f32 to vector<8x128xf32>
    %223 = arith.cmpf ogt, %221, %222 : vector<8x128xf32>
    %224 = arith.select %223, %220, %199 : vector<8x128xi1>, vector<8x128xf32>
    %225 = arith.select %223, %218, %200 : vector<8x128xi1>, vector<8x128xf32>
    %cst_80 = arith.constant -1.000000e+04 : f32
    %226 = vector.broadcast %cst_80 : f32 to vector<8x128xf32>
    %227 = arith.select %223, %220, %226 : vector<8x128xi1>, vector<8x128xf32>
    %228 = arith.maximumf %203, %227 : vector<8x128xf32>
    %c56_81 = arith.constant 56 : index
    %c0_82 = arith.constant 0 : index
    %229 = vector.load %arg5[%c56_81, %c0_82] : memref<64x512xf32, #tpu.memory_space<vmem>>, vector<8x512xf32>
    %230 = arith.truncf %224 : vector<8x128xf32> to vector<8x128xbf16>
    %c0_83 = arith.constant 0 : index
    %c0_84 = arith.constant 0 : index
    %231 = vector.load %arg2[%c0_83, %c0_84] : memref<128x512xbf16, #tpu.memory_space<vmem>>, vector<128x512xbf16>
    %cst_85 = arith.constant dense<0.000000e+00> : vector<8x512xf32>
    %232 = tpu.matmul %230, %231, %cst_85 {dimension_numbers = #tpu.dot_dimension_numbers<[1], [0], [0], [1], [0, 0, 1, 1], [], []>} : vector<8x128xbf16>, vector<128x512xbf16>, vector<8x512xf32> -> vector<8x512xf32>
    %233 = arith.addf %229, %232 : vector<8x512xf32>
    %234 = math.tanh %233 : vector<8x512xf32>
    %235 = arith.mulf %234, %7 : vector<8x512xf32>
    %236 = arith.addf %235, %10 : vector<8x512xf32>
    %237 = vector.extract_strided_slice %236 {offsets = [0, 0], sizes = [8, 128], strides = [1, 1]} : vector<8x512xf32> to vector<8x128xf32>
    %238 = vector.extract_strided_slice %236 {offsets = [0, 128], sizes = [8, 128], strides = [1, 1]} : vector<8x512xf32> to vector<8x128xf32>
    %239 = vector.extract_strided_slice %236 {offsets = [0, 256], sizes = [8, 128], strides = [1, 1]} : vector<8x512xf32> to vector<8x128xf32>
    %240 = vector.extract_strided_slice %236 {offsets = [0, 384], sizes = [8, 128], strides = [1, 1]} : vector<8x512xf32> to vector<8x128xf32>
    %241 = arith.mulf %238, %225 : vector<8x128xf32>
    %242 = arith.mulf %237, %239 : vector<8x128xf32>
    %243 = arith.addf %241, %242 : vector<8x128xf32>
    %244 = math.tanh %243 : vector<8x128xf32>
    %245 = arith.mulf %240, %244 : vector<8x128xf32>
    %c56_86 = arith.constant 56 : index
    %c0_87 = arith.constant 0 : index
    %246 = vector.load %arg0[%c56_86, %c0_87] : memref<128x128xf32, #tpu.memory_space<vmem>>, vector<8x128xf32>
    %cst_88 = arith.constant 5.000000e-01 : f32
    %247 = vector.broadcast %cst_88 : f32 to vector<8x128xf32>
    %248 = arith.cmpf ogt, %246, %247 : vector<8x128xf32>
    %cst_89 = arith.constant -1.000000e+04 : f32
    %249 = vector.broadcast %cst_89 : f32 to vector<8x128xf32>
    %250 = arith.select %248, %245, %249 : vector<8x128xi1>, vector<8x128xf32>
    %251 = arith.maximumf %228, %250 : vector<8x128xf32>
    %c64_90 = arith.constant 64 : index
    %c0_91 = arith.constant 0 : index
    %252 = vector.load %arg0[%c64_90, %c0_91] : memref<128x128xf32, #tpu.memory_space<vmem>>, vector<8x128xf32>
    %c72 = arith.constant 72 : index
    %c0_92 = arith.constant 0 : index
    %253 = vector.load %arg0[%c72, %c0_92] : memref<128x128xf32, #tpu.memory_space<vmem>>, vector<8x128xf32>
    %254 = arith.maximumf %252, %253 : vector<8x128xf32>
    %c80 = arith.constant 80 : index
    %c0_93 = arith.constant 0 : index
    %255 = vector.load %arg0[%c80, %c0_93] : memref<128x128xf32, #tpu.memory_space<vmem>>, vector<8x128xf32>
    %256 = arith.maximumf %254, %255 : vector<8x128xf32>
    %c88 = arith.constant 88 : index
    %c0_94 = arith.constant 0 : index
    %257 = vector.load %arg0[%c88, %c0_94] : memref<128x128xf32, #tpu.memory_space<vmem>>, vector<8x128xf32>
    %258 = arith.maximumf %256, %257 : vector<8x128xf32>
    %c96 = arith.constant 96 : index
    %c0_95 = arith.constant 0 : index
    %259 = vector.load %arg0[%c96, %c0_95] : memref<128x128xf32, #tpu.memory_space<vmem>>, vector<8x128xf32>
    %260 = arith.maximumf %258, %259 : vector<8x128xf32>
    %c104 = arith.constant 104 : index
    %c0_96 = arith.constant 0 : index
    %261 = vector.load %arg0[%c104, %c0_96] : memref<128x128xf32, #tpu.memory_space<vmem>>, vector<8x128xf32>
    %262 = arith.maximumf %260, %261 : vector<8x128xf32>
    %c112 = arith.constant 112 : index
    %c0_97 = arith.constant 0 : index
    %263 = vector.load %arg0[%c112, %c0_97] : memref<128x128xf32, #tpu.memory_space<vmem>>, vector<8x128xf32>
    %264 = arith.maximumf %262, %263 : vector<8x128xf32>
    %c120 = arith.constant 120 : index
    %c0_98 = arith.constant 0 : index
    %265 = vector.load %arg0[%c120, %c0_98] : memref<128x128xf32, #tpu.memory_space<vmem>>, vector<8x128xf32>
    %266 = arith.maximumf %264, %265 : vector<8x128xf32>
    %c512 = arith.constant 512 : index
    %c0_99 = arith.constant 0 : index
    %267 = vector.load %arg3[%c512, %c0_99] : memref<528x128xbf16, #tpu.memory_space<vmem>>, vector<16x128xbf16>
    %268 = arith.extf %267 : vector<16x128xbf16> to vector<16x128xf32>
    %269 = vector.extract_strided_slice %268 {offsets = [0, 0], sizes = [1, 128], strides = [1, 1]} : vector<16x128xf32> to vector<1x128xf32>
    %270 = vector.extract_strided_slice %268 {offsets = [1, 0], sizes = [1, 128], strides = [1, 1]} : vector<16x128xf32> to vector<1x128xf32>
    %271 = vector.extract_strided_slice %268 {offsets = [2, 0], sizes = [1, 128], strides = [1, 1]} : vector<16x128xf32> to vector<1x128xf32>
    %272 = vector.extract_strided_slice %268 {offsets = [3, 0], sizes = [1, 128], strides = [1, 1]} : vector<16x128xf32> to vector<1x128xf32>
    %273 = arith.truncf %266 : vector<8x128xf32> to vector<8x128xbf16>
    %c0_100 = arith.constant 0 : index
    %c0_101 = arith.constant 0 : index
    %274 = vector.load %arg3[%c0_100, %c0_101] : memref<528x128xbf16, #tpu.memory_space<vmem>>, vector<128x128xbf16>
    %cst_102 = arith.constant dense<0.000000e+00> : vector<8x128xf32>
    %275 = tpu.matmul %273, %274, %cst_102 {dimension_numbers = #tpu.dot_dimension_numbers<[1], [0], [0], [1], [0, 0, 1, 1], [], []>} : vector<8x128xbf16>, vector<128x128xbf16>, vector<8x128xf32> -> vector<8x128xf32>
    %276 = vector.broadcast %269 : vector<1x128xf32> to vector<8x128xf32>
    %277 = arith.addf %275, %276 : vector<8x128xf32>
    %cst_103 = arith.constant 0.000000e+00 : f32
    %278 = vector.broadcast %cst_103 : f32 to vector<8x128xf32>
    %279 = arith.maximumf %277, %278 : vector<8x128xf32>
    %280 = arith.truncf %279 : vector<8x128xf32> to vector<8x128xbf16>
    %c128 = arith.constant 128 : index
    %c0_104 = arith.constant 0 : index
    %281 = vector.load %arg3[%c128, %c0_104] : memref<528x128xbf16, #tpu.memory_space<vmem>>, vector<128x128xbf16>
    %cst_105 = arith.constant dense<0.000000e+00> : vector<8x128xf32>
    %282 = tpu.matmul %280, %281, %cst_105 {dimension_numbers = #tpu.dot_dimension_numbers<[1], [0], [0], [1], [0, 0, 1, 1], [], []>} : vector<8x128xbf16>, vector<128x128xbf16>, vector<8x128xf32> -> vector<8x128xf32>
    %283 = vector.broadcast %270 : vector<1x128xf32> to vector<8x128xf32>
    %284 = arith.addf %282, %283 : vector<8x128xf32>
    %cst_106 = arith.constant 0.000000e+00 : f32
    %285 = vector.broadcast %cst_106 : f32 to vector<8x128xf32>
    %286 = arith.maximumf %284, %285 : vector<8x128xf32>
    %287 = arith.truncf %286 : vector<8x128xf32> to vector<8x128xbf16>
    %c256 = arith.constant 256 : index
    %c0_107 = arith.constant 0 : index
    %288 = vector.load %arg3[%c256, %c0_107] : memref<528x128xbf16, #tpu.memory_space<vmem>>, vector<128x128xbf16>
    %cst_108 = arith.constant dense<0.000000e+00> : vector<8x128xf32>
    %289 = tpu.matmul %287, %288, %cst_108 {dimension_numbers = #tpu.dot_dimension_numbers<[1], [0], [0], [1], [0, 0, 1, 1], [], []>} : vector<8x128xbf16>, vector<128x128xbf16>, vector<8x128xf32> -> vector<8x128xf32>
    %290 = vector.broadcast %271 : vector<1x128xf32> to vector<8x128xf32>
    %291 = arith.addf %289, %290 : vector<8x128xf32>
    %292 = arith.truncf %251 : vector<8x128xf32> to vector<8x128xbf16>
    %c384 = arith.constant 384 : index
    %c0_109 = arith.constant 0 : index
    %293 = vector.load %arg3[%c384, %c0_109] : memref<528x128xbf16, #tpu.memory_space<vmem>>, vector<128x128xbf16>
    %cst_110 = arith.constant dense<0.000000e+00> : vector<8x128xf32>
    %294 = tpu.matmul %292, %293, %cst_110 {dimension_numbers = #tpu.dot_dimension_numbers<[1], [0], [0], [1], [0, 0, 1, 1], [], []>} : vector<8x128xbf16>, vector<128x128xbf16>, vector<8x128xf32> -> vector<8x128xf32>
    %295 = vector.broadcast %272 : vector<1x128xf32> to vector<8x128xf32>
    %296 = arith.addf %294, %295 : vector<8x128xf32>
    %297 = vector.extract_strided_slice %291 {offsets = [0, 0], sizes = [8, 1], strides = [1, 1]} : vector<8x128xf32> to vector<8x1xf32>
    %298 = vector.extract_strided_slice %291 {offsets = [0, 1], sizes = [8, 1], strides = [1, 1]} : vector<8x128xf32> to vector<8x1xf32>
    %299 = arith.subf %297, %298 : vector<8x1xf32>
    %300 = arith.negf %299 : vector<8x1xf32>
    %301 = math.exp %300 : vector<8x1xf32>
    %cst_111 = arith.constant 1.000000e+00 : f32
    %302 = vector.broadcast %cst_111 : f32 to vector<8x1xf32>
    %303 = arith.addf %302, %301 : vector<8x1xf32>
    %304 = arith.divf %302, %303 : vector<8x1xf32>
    %cst_112 = arith.constant 1.000000e+00 : f32
    %305 = vector.broadcast %cst_112 : f32 to vector<8x1xf32>
    %306 = arith.subf %305, %304 : vector<8x1xf32>
    %c0_113 = arith.constant 0 : index
    %c0_114 = arith.constant 0 : index
    %307 = vector.load %arg4[%c0_113, %c0_114] : memref<8x128xf32, #tpu.memory_space<vmem>>, vector<8x128xf32>
    tpu.vector_store %arg4[%c0_113, %c0_114], %296 {strides = array<i32>} : memref<8x128xf32, #tpu.memory_space<vmem>>, vector<8x128xf32>,
    %308 = vector.extract_strided_slice %296 {offsets = [0, 0], sizes = [8, 2], strides = [1, 1]} : vector<8x128xf32> to vector<8x2xf32>
    %309 = vector.broadcast %304 : vector<8x1xf32> to vector<8x2xf32>
    %310 = arith.mulf %308, %309 : vector<8x2xf32>
    %311 = vector.extract_strided_slice %296 {offsets = [0, 2], sizes = [8, 2], strides = [1, 1]} : vector<8x128xf32> to vector<8x2xf32>
    %312 = vector.broadcast %306 : vector<8x1xf32> to vector<8x2xf32>
    %313 = arith.mulf %311, %312 : vector<8x2xf32>
    %314 = arith.addf %310, %313 : vector<8x2xf32>
    %c0_115 = arith.constant 0 : index
    %c0_116 = arith.constant 0 : index
    %315 = vector.load %arg4[%c0_115, %c0_116] : memref<8x128xf32, #tpu.memory_space<vmem>>, vector<8x2xf32>
    tpu.vector_store %arg4[%c0_115, %c0_116], %314 {strides = array<i32>} : memref<8x128xf32, #tpu.memory_space<vmem>>, vector<8x2xf32>,
    return
  }
}

</mosaic_0001>

<bundles_post_ra>
// kernel: forward.1
= control target key start
LH: loop header
LB: loop body
LE: loop exit
PB: predicated region body
PF: predicated region fallthrough
CT: control target
= control target key end

     0   :  { %v3990_v1 = vmov 0   ;;  %s2528_s22 = smov 127   ;;  %s2529_s23 = smov 126   ;;  %s3984_s1 = inlined_call_operand.vmem [shape: bf16[128,512], index: 1, kind: input, shape index: {}]   ;;  %s3985_s2 = inlined_call_operand.vmem [shape: bf16[128,512], index: 2, kind: input, shape index: {}]   ;;  %s3986_s0 = inlined_call_operand.vmem [shape: f32[128,128], index: 0, kind: input, shape index: {}]   ;;  %s3987_s3 = inlined_call_operand.vmem [shape: bf16[528,128], index: 3, kind: input, shape index: {}]   ;;  %s3988_s4 = inlined_call_operand.vmem [shape: f32[8,128], index: 4, kind: output, shape index: {}]  }
   0x1   :  { %v2280_v0 = vld [vmem:[%s3984_s1 + $0x4] ss:$16 sps:$4 sm:$0xff]   ;;  %283 = vmatprep.mubr.bf16.mxu0 %v3990_v1  ;;  %356 = vmatprep.mubr.bf16.mxu1 %v3990_v1  ;;  %v2282_v2 = vld [vmem:[%s3984_s1 + $0xc] ss:$16 sps:$4 sm:$0xff]   ;;  %v2284_v3 = vld [vmem:[%s3984_s1] ss:$16 sps:$4 sm:$0xff]  }
   0x2   :  { %2279 = vset.pattern.permute.xlu1 %v3990_v1  ;;  %2278 = vset.pattern.permute.xlu0 %v3990_v1  ;;  %v2285_v4 = vld [vmem:[%s3984_s1 + $0x8] ss:$16 sps:$4 sm:$0xff]   ;;  %v2286_v5 = vld [vmem:[%s3984_s1 + $0x24] ss:$16 sps:$4 sm:$0xff]   ;;  %v2288_v6 = vld [vmem:[%s3984_s1 + $0x2c] ss:$16 sps:$4 sm:$0xff]  }
   0x3   :  { %251 = vmatprep.subr.bf16.mxu0 %v2280_v0  ;;  %324 = vmatprep.subr.bf16.mxu1 %v2282_v2  ;;  %v2290_v7 = vld [vmem:[%s3984_s1 + $0x20] ss:$16 sps:$4 sm:$0xff]   ;;  %v2291_v8 = vld [vmem:[%s3984_s1 + $0x28] ss:$16 sps:$4 sm:$0xff]   ;;  %v2292_v9 = vld [vmem:[%s3984_s1 + $0x44] ss:$16 sps:$4 sm:$0xff]  }
   0x4   :  { %252 = vmatpush1.bf16.msra.mxu0 %v2284_v3  ;;  %325 = vmatpush1.bf16.msra.mxu1 %v2285_v4  ;;  %v2294_v10 = vld [vmem:[%s3984_s1 + $0x4c] ss:$16 sps:$4 sm:$0xff]   ;;  %v2296_v11 = vld [vmem:[%s3984_s1 + $0x40] ss:$16 sps:$4 sm:$0xff]   ;;  %v2297_v12 = vld [vmem:[%s3984_s1 + $0x48] ss:$16 sps:$4 sm:$0xff]  }
   0x5   :  { %253 = vmatprep.subr.bf16.mxu0 %v2286_v5  ;;  %326 = vmatprep.subr.bf16.mxu1 %v2288_v6  ;;  %v2298_v13 = vld [vmem:[%s3984_s1 + $0x64] ss:$16 sps:$4 sm:$0xff]   ;;  %v2300_v14 = vld [vmem:[%s3984_s1 + $0x6c] ss:$16 sps:$4 sm:$0xff]   ;;  %v2302_v15 = vld [vmem:[%s3984_s1 + $0x60] ss:$16 sps:$4 sm:$0xff]  }
   0x6   :  { %v2303_v16 = vld [vmem:[%s3984_s1 + $0x68] ss:$16 sps:$4 sm:$0xff]   ;;  %v2304_v17 = vld [vmem:[%s3984_s1 + $0x84] ss:$16 sps:$4 sm:$0xff]   ;;  %v2306_v18 = vld [vmem:[%s3984_s1 + $0x8c] ss:$16 sps:$4 sm:$0xff]  }
   0x7   :  { %v2308_v19 = vld [vmem:[%s3984_s1 + $0x80] ss:$16 sps:$4 sm:$0xff]   ;;  %v2309_v20 = vld [vmem:[%s3984_s1 + $0x88] ss:$16 sps:$4 sm:$0xff]   ;;  %v2310_v21 = vld [vmem:[%s3984_s1 + $0xa4] ss:$16 sps:$4 sm:$0xff]  }
   0x8   :  { %254 = vmatpush1.bf16.msra.mxu0 %v2290_v7  ;;  %327 = vmatpush1.bf16.msra.mxu1 %v2291_v8  ;;  %v2312_v22 = vld [vmem:[%s3984_s1 + $0xac] ss:$16 sps:$4 sm:$0xff]   ;;  %v2314_v23 = vld [vmem:[%s3984_s1 + $0xa0] ss:$16 sps:$4 sm:$0xff]   ;;  %v2315_v24 = vld [vmem:[%s3984_s1 + $0xa8] ss:$16 sps:$4 sm:$0xff]  }
   0x9   :  { %255 = vmatprep.subr.bf16.mxu0 %v2292_v9  ;;  %328 = vmatprep.subr.bf16.mxu1 %v2294_v10  ;;  %v2316_v25 = vld [vmem:[%s3984_s1 + $0xc4] ss:$16 sps:$4 sm:$0xff]   ;;  %v2318_v26 = vld [vmem:[%s3984_s1 + $0xcc] ss:$16 sps:$4 sm:$0xff]   ;;  %v2320_v27 = vld [vmem:[%s3984_s1 + $0xc0] ss:$16 sps:$4 sm:$0xff]  }
   0xa   :  { %v2321_v28 = vld [vmem:[%s3984_s1 + $0xc8] ss:$16 sps:$4 sm:$0xff]   ;;  %v2322_v29 = vld [vmem:[%s3984_s1 + $0xe4] ss:$16 sps:$4 sm:$0xff]   ;;  %v2324_v30 = vld [vmem:[%s3984_s1 + $0xec] ss:$16 sps:$4 sm:$0xff]  }
   0xb   :  { %v2326_v31 = vld [vmem:[%s3984_s1 + $0xe0] ss:$16 sps:$4 sm:$0xff]   ;;  %v2327_v32 = vld [vmem:[%s3984_s1 + $0xe8] ss:$16 sps:$4 sm:$0xff]   ;;  %v2664_v35 = vld [vmem:[%s3985_s2 + $0x4] ss:$16 sps:$4 sm:$0xff]  }
   0xc   :  { %256 = vmatpush1.bf16.msra.mxu0 %v2296_v11  ;;  %329 = vmatpush1.bf16.msra.mxu1 %v2297_v12  ;;  %v47_v33 = vld [vmem:[%s3986_s0 + $0x40] sm:$0xff]  ;;  %v48_v34 = vld [vmem:[%s3986_s0 + $0x48] sm:$0xff]  ;;  %v49_v44 = vld [vmem:[%s3986_s0 + $0x50] sm:$0xff] }
   0xd   :  { %257 = vmatprep.subr.bf16.mxu0 %v2298_v13  ;;  %330 = vmatprep.subr.bf16.mxu1 %v2300_v14  ;;  %v2669_v36 = vld [vmem:[%s3985_s2 + $0xc] ss:$16 sps:$4 sm:$0xff]   ;;  %v55_v37 = vpack.c.bf16 %v48_v34, %v47_v33  ;;  %v2674_v38 = vld [vmem:[%s3985_s2] ss:$16 sps:$4 sm:$0xff]   ;;  %v2679_v39 = vld [vmem:[%s3985_s2 + $0x8] ss:$16 sps:$4 sm:$0xff]   ;;  %v3989_v14 = vlaneseq }
   0xe   :  { %4041 = vst [vmem:[#allocation3_spill] sm:$0xff] %v2669_v36  ;;  %v2686_v40 = vld [vmem:[%s3985_s2 + $0x24] ss:$16 sps:$4 sm:$0xff]   ;;  %v2691_v41 = vld [vmem:[%s3985_s2 + $0x2c] ss:$16 sps:$4 sm:$0xff]  }
   0xf   :  { %v2696_v42 = vld [vmem:[%s3985_s2 + $0x20] ss:$16 sps:$4 sm:$0xff]   ;;  %v2701_v43 = vld [vmem:[%s3985_s2 + $0x28] ss:$16 sps:$4 sm:$0xff]   ;;  %v2714_v46 = vld [vmem:[%s3985_s2 + $0x44] ss:$16 sps:$4 sm:$0xff]  }
  0x10   :  { %258 = vmatpush1.bf16.msra.mxu0 %v2302_v15  ;;  %331 = vmatpush1.bf16.msra.mxu1 %v2303_v16  ;;  %v50_v45 = vld [vmem:[%s3986_s0 + $0x58] sm:$0xff]  ;;  %v2728_v49 = vld [vmem:[%s3985_s2 + $0x40] ss:$16 sps:$4 sm:$0xff]   ;;  %v2740_v51 = vld [vmem:[%s3985_s2 + $0x64] ss:$16 sps:$4 sm:$0xff]  }
  0x11   :  { %259 = vmatprep.subr.bf16.mxu0 %v2304_v17  ;;  %332 = vmatprep.subr.bf16.mxu1 %v2306_v18  ;;  %v2721_v47 = vld [vmem:[%s3985_s2 + $0x4c] ss:$16 sps:$4 sm:$0xff]   ;;  %v56_v48 = vpack.c.bf16 %v50_v45, %v49_v44  ;;  %v2733_v50 = vld [vmem:[%s3985_s2 + $0x48] ss:$16 sps:$4 sm:$0xff]   ;;  %v2752_v53 = vld [vmem:[%s3985_s2 + $0x60] ss:$16 sps:$4 sm:$0xff]  }
  0x12   :  { %v2747_v52 = vld [vmem:[%s3985_s2 + $0x6c] ss:$16 sps:$4 sm:$0xff]   ;;  %v2757_v54 = vld [vmem:[%s3985_s2 + $0x68] ss:$16 sps:$4 sm:$0xff]   ;;  %v51_v55 = vld [vmem:[%s3986_s0 + $0x60] sm:$0xff] }
  0x13   :  { %v52_v56 = vld [vmem:[%s3986_s0 + $0x68] sm:$0xff]  ;;  %v2772_v57 = vld [vmem:[%s3985_s2 + $0x84] ss:$16 sps:$4 sm:$0xff]   ;;  %v2786_v60 = vld [vmem:[%s3985_s2 + $0x80] ss:$16 sps:$4 sm:$0xff]  }
  0x14   :  { %260 = vmatpush1.bf16.msra.mxu0 %v2308_v19  ;;  %333 = vmatpush1.bf16.msra.mxu1 %v2309_v20  ;;  %v2777_v58 = vld [vmem:[%s3985_s2 + $0x8c] ss:$16 sps:$4 sm:$0xff]   ;;  %v57_v59 = vpack.c.bf16 %v52_v56, %v51_v55  ;;  %v2791_v61 = vld [vmem:[%s3985_s2 + $0x88] ss:$16 sps:$4 sm:$0xff]   ;;  %v2798_v62 = vld [vmem:[%s3985_s2 + $0xa4] ss:$16 sps:$4 sm:$0xff]  }
  0x15   :  { %261 = vmatprep.subr.bf16.mxu0 %v2310_v21  ;;  %334 = vmatprep.subr.bf16.mxu1 %v2312_v22  ;;  %v2803_v63 = vld [vmem:[%s3985_s2 + $0xac] ss:$16 sps:$4 sm:$0xff]   ;;  %v2808_v0 = vld [vmem:[%s3985_s2 + $0xa0] ss:$16 sps:$4 sm:$0xff]   ;;  %v2815_v2 = vld [vmem:[%s3985_s2 + $0xa8] ss:$16 sps:$4 sm:$0xff]  }
  0x16   :  { %v53_v3 = vld [vmem:[%s3986_s0 + $0x70] sm:$0xff]  ;;  %v54_v4 = vld [vmem:[%s3986_s0 + $0x78] sm:$0xff]  ;;  %v2928_v21 = vand.u32 127, %v3989_v14  ;;  %v4057_v55 = vmov 0  ;;  %v4060_v56 = vmov 0 }
  0x17   :  { %v2828_v5 = vld [vmem:[%s3985_s2 + $0xc4] ss:$16 sps:$4 sm:$0xff]   ;;  %v2833_v6 = vld [vmem:[%s3985_s2 + $0xcc] ss:$16 sps:$4 sm:$0xff]   ;;  %v58_v7 = vpack.c.bf16 %v54_v4, %v53_v3  ;;  %v2842_v8 = vld [vmem:[%s3985_s2 + $0xc0] ss:$16 sps:$4 sm:$0xff]  }
  0x18   :  { %262 = vmatpush1.bf16.msra.mxu0 %v2314_v23  ;;  %335 = vmatpush1.bf16.msra.mxu1 %v2315_v24  ;;  %v2847_v9 = vld [vmem:[%s3985_s2 + $0xc8] ss:$16 sps:$4 sm:$0xff]   ;;  %v2854_v10 = vld [vmem:[%s3985_s2 + $0xe4] ss:$16 sps:$4 sm:$0xff]   ;;  %v2859_v11 = vld [vmem:[%s3985_s2 + $0xec] ss:$16 sps:$4 sm:$0xff]  }
  0x19   :  { %263 = vmatprep.subr.bf16.mxu0 %v2316_v25  ;;  %336 = vmatprep.subr.bf16.mxu1 %v2318_v26  ;;  %v2866_v12 = vld [vmem:[%s3985_s2 + $0xe0] ss:$16 sps:$4 sm:$0xff]   ;;  %v2871_v13 = vld [vmem:[%s3985_s2 + $0xe8] ss:$16 sps:$4 sm:$0xff]   ;;  %v2935_v24 = vadd.s32 256, %v2928_v21  ;;  %v2938_v25 = vadd.s32 128, %v2928_v21 }
  0x1a   :  { %v2941_v26 = vadd.s32 384, %v2928_v21  ;;  %vm43_vm0 = vcmp.lt.s32.totalorder %v2928_v21, 64 }
  0x1b   :  { %v41_v33 = vand.u32 127, %v2935_v24  ;;  %v40_v44 = vand.u32 127, %v2938_v25 }
  0x1c   :  { %264 = vmatpush1.bf16.msra.mxu0 %v2320_v27  ;;  %337 = vmatpush1.bf16.msra.mxu1 %v2321_v28  ;;  %v42_v45 = vand.u32 127, %v2941_v26 }
  0x1d   :  { %265 = vmatprep.subr.bf16.mxu0 %v2322_v29  ;;  %338 = vmatprep.subr.bf16.mxu1 %v2324_v30  ;;  %vm2959_vm1 = vcmp.lt.s32.totalorder %v41_v33, 64  ;;  %vm2963_vm2 = vcmp.lt.s32.totalorder %v40_v44, 64 }
  0x1e   :  { %v4058_v55 = vsel %vm2963_vm2, 4294967295, %v4057_v55  ;;  %vm2967_vm3 = vcmp.lt.s32.totalorder %v42_v45, 64 }
  0x1f   :  { %4059 = vst [vmem:[#allocation17_spill] sm:$0xff] %v4058_v55  ;;  %v4061_v56 = vsel %vm2967_vm3, 4294967295, %v4060_v56 }
  0x20   :  { %266 = vmatpush1.bf16.msra.mxu0 %v2326_v31  ;;  %339 = vmatpush1.bf16.msra.mxu1 %v2327_v32  ;;  %4062 = vst [vmem:[#allocation18_spill] sm:$0xff] %v4061_v56 }
  0x21   :  { %657 = vmatprep.subr.bf16.mxu0 %v2664_v35  ;;  %698 = vmatprep.subr.bf16.mxu1 %v2669_v36 }
  0x23   :  { %284 = vmatmul.mubr.bf16.vlgmr.msra.gmra.mrb[0].mxu0 %v55_v37  ;;  %357 = vmatmul.mubr.bf16.vlgmr.msra.gmra.mrb[0].mxu1 %v55_v37 }
  0x24   :  { %658 = vmatpush1.bf16.msra.mxu0 %v2674_v38  ;;  %699 = vmatpush1.bf16.msra.mxu1 %v2679_v39 }
  0x25   :  { %659 = vmatprep.subr.bf16.mxu0 %v2686_v40  ;;  %700 = vmatprep.subr.bf16.mxu1 %v2691_v41 }
  0x26   :  { %293 = vmatprep.mubr.bf16.mxu0 %v3990_v1  ;;  %366 = vmatprep.mubr.bf16.mxu1 %v3990_v1 }
  0x28   :  { %660 = vmatpush1.bf16.msra.mxu0 %v2696_v42  ;;  %701 = vmatpush1.bf16.msra.mxu1 %v2701_v43 }
  0x29   :  { %661 = vmatprep.subr.bf16.mxu0 %v2714_v46  ;;  %702 = vmatprep.subr.bf16.mxu1 %v2721_v47 }
  0x2b   :  { %294 = vmatmul.mubr.bf16.gmra.mrb[4].mxu0 %v56_v48  ;;  %367 = vmatmul.mubr.bf16.gmra.mrb[4].mxu1 %v56_v48  ;;  %v4054_v48 = vmov 0 }
  0x2c   :  { %662 = vmatpush1.bf16.msra.mxu0 %v2728_v49  ;;  %703 = vmatpush1.bf16.msra.mxu1 %v2733_v50  ;;  %v4055_v48 = vsel %vm2959_vm1, 4294967295, %v4054_v48 }
  0x2d   :  { %663 = vmatprep.subr.bf16.mxu0 %v2740_v51  ;;  %704 = vmatprep.subr.bf16.mxu1 %v2747_v52  ;;  %4056 = vst [vmem:[#allocation16_spill] sm:$0xff] %v4055_v48 }
  0x2e   :  { %303 = vmatprep.mubr.bf16.mxu0 %v3990_v1  ;;  %376 = vmatprep.mubr.bf16.mxu1 %v3990_v1 }
  0x30   :  { %664 = vmatpush1.bf16.msra.mxu0 %v2752_v53  ;;  %705 = vmatpush1.bf16.msra.mxu1 %v2757_v54 }
  0x31   :  { %665 = vmatprep.subr.bf16.mxu0 %v2772_v57  ;;  %706 = vmatprep.subr.bf16.mxu1 %v2777_v58 }
  0x33   :  { %304 = vmatmul.mubr.bf16.gmra.mrb[8].mxu0 %v57_v59  ;;  %377 = vmatmul.mubr.bf16.gmra.mrb[8].mxu1 %v57_v59 }
  0x34   :  { %666 = vmatpush1.bf16.msra.mxu0 %v2786_v60  ;;  %707 = vmatpush1.bf16.msra.mxu1 %v2791_v61 }
  0x35   :  { %667 = vmatprep.subr.bf16.mxu0 %v2798_v62  ;;  %708 = vmatprep.subr.bf16.mxu1 %v2803_v63 }
  0x36   :  { %313 = vmatprep.mubr.bf16.mxu0 %v3990_v1  ;;  %386 = vmatprep.mubr.bf16.mxu1 %v3990_v1 }
  0x38   :  { %668 = vmatpush1.bf16.msra.mxu0 %v2808_v0  ;;  %709 = vmatpush1.bf16.msra.mxu1 %v2815_v2 }
  0x39   :  { %669 = vmatprep.subr.bf16.mxu0 %v2828_v5  ;;  %710 = vmatprep.subr.bf16.mxu1 %v2833_v6 }
  0x3b   :  { %314 = vmatmul.mubr.bf16.gmra.mrb[12].mxu0 %v58_v7  ;;  %387 = vmatmul.mubr.bf16.gmra.mrb[12].mxu1 %v58_v7 }
  0x3c   :  { %670 = vmatpush1.bf16.msra.mxu0 %v2842_v8  ;;  %711 = vmatpush1.bf16.msra.mxu1 %v2847_v9 }
  0x3d   :  { %671 = vmatprep.subr.bf16.mxu0 %v2854_v10  ;;  %712 = vmatprep.subr.bf16.mxu1 %v2859_v11 }
  0x3e   :  { %689 = vmatprep.mubr.bf16.mxu0 %v3990_v1  ;;  %730 = vmatprep.mubr.bf16.mxu1 %v3990_v1 }
  0x40   :  { %672 = vmatpush1.bf16.msra.mxu0 %v2866_v12  ;;  %713 = vmatpush1.bf16.msra.mxu1 %v2871_v13 }
  0x41   :  { %771 = vmatprep.subr.bf16.mxu0 %v2664_v35  ;;  %812 = vmatprep.subr.bf16.mxu1 %v2669_v36 }
  0x43   :  { %690 = vmatmul.mubr.bf16.vlgmr.msra.gmra.mrb[16].mxu0 %v3990_v1  ;;  %731 = vmatmul.mubr.bf16.vlgmr.msra.gmra.mrb[16].mxu1 %v3990_v1 }
  0x44   :  { %772 = vmatpush1.bf16.msra.mxu0 %v2674_v38  ;;  %813 = vmatpush1.bf16.msra.mxu1 %v2679_v39 }
  0x45   :  { %773 = vmatprep.subr.bf16.mxu0 %v2686_v40  ;;  %814 = vmatprep.subr.bf16.mxu1 %v2691_v41 }
  0x46   :  { %803 = vmatprep.mubr.bf16.mxu0 %v3990_v1  ;;  %844 = vmatprep.mubr.bf16.mxu1 %v3990_v1 }
  0x48   :  { %774 = vmatpush1.bf16.msra.mxu0 %v2696_v42  ;;  %815 = vmatpush1.bf16.msra.mxu1 %v2701_v43 }
  0x49   :  { %775 = vmatprep.subr.bf16.mxu0 %v2714_v46  ;;  %816 = vmatprep.subr.bf16.mxu1 %v2721_v47 }
  0x4c   :  { %776 = vmatpush1.bf16.msra.mxu0 %v2728_v49  ;;  %817 = vmatpush1.bf16.msra.mxu1 %v2733_v50 }
  0x4d   :  { %777 = vmatprep.subr.bf16.mxu0 %v2740_v51  ;;  %818 = vmatprep.subr.bf16.mxu1 %v2747_v52 }
  0x50   :  { %778 = vmatpush1.bf16.msra.mxu0 %v2752_v53  ;;  %819 = vmatpush1.bf16.msra.mxu1 %v2757_v54 }
  0x51   :  { %779 = vmatprep.subr.bf16.mxu0 %v2772_v57  ;;  %820 = vmatprep.subr.bf16.mxu1 %v2777_v58 }
  0x54   :  { %780 = vmatpush1.bf16.msra.mxu0 %v2786_v60  ;;  %821 = vmatpush1.bf16.msra.mxu1 %v2791_v61 }
  0x55   :  { %781 = vmatprep.subr.bf16.mxu0 %v2798_v62  ;;  %822 = vmatprep.subr.bf16.mxu1 %v2803_v63 }
  0x58   :  { %782 = vmatpush1.bf16.msra.mxu0 %v2808_v0  ;;  %823 = vmatpush1.bf16.msra.mxu1 %v2815_v2 }
  0x59   :  { %783 = vmatprep.subr.bf16.mxu0 %v2828_v5  ;;  %824 = vmatprep.subr.bf16.mxu1 %v2833_v6 }
  0x5c   :  { %784 = vmatpush1.bf16.msra.mxu0 %v2842_v8  ;;  %825 = vmatpush1.bf16.msra.mxu1 %v2847_v9 }
  0x5d   :  { %785 = vmatprep.subr.bf16.mxu0 %v2854_v10  ;;  %826 = vmatprep.subr.bf16.mxu1 %v2859_v11 }
  0x60   :  { %786 = vmatpush1.bf16.msra.mxu0 %v2866_v12  ;;  %827 = vmatpush1.bf16.msra.mxu1 %v2871_v13 }
  0x61   :  { %885 = vmatprep.subr.bf16.mxu0 %v2664_v35  ;;  %926 = vmatprep.subr.bf16.mxu1 %v2669_v36 }
  0xf6   :  { %v2917_v15 = vpop.f32.mrb[0].mxu0  ;;  %v2919_v16 = vpop.f32.mrb[0].mxu1 }
  0xf7   :  { %4042 = vst [vmem:[#allocation4_spill] sm:$0xff] %v2919_v16  ;;  %v2921_v17 = vpop.f32.mrb[1].mxu0  ;;  %v2923_v18 = vpop.f32.mrb[1].mxu1 }
  0xf8   :  { %4043 = vst [vmem:[#allocation5_spill] sm:$0xff] %v2921_v17  ;;  %4044 = vst [vmem:[#allocation6_spill] sm:$0xff] %v2923_v18  ;;  %v289_v19 = vpop.f32.mrb[2].mxu0  ;;  %v2925_v20 = vpop.f32.mrb[2].mxu1 }
  0xf9   :  { %4045 = vst [vmem:[#allocation7_spill] sm:$0xff] %v2925_v20  ;;  %v2930_v22 = vpop.f32.mrb[3].mxu0  ;;  %v2932_v23 = vpop.f32.mrb[3].mxu1 }
  0xfa   :  { %4046 = vst [vmem:[#allocation8_spill] sm:$0xff] %v2930_v22  ;;  %4047 = vst [vmem:[#allocation9_spill] sm:$0xff] %v2932_v23 }
  0xfe   :  { %v295_v27 = vpop.f32.mrb[4].mxu0  ;;  %v2943_v28 = vpop.f32.mrb[4].mxu1 }
  0xff   :  { %4048 = vst [vmem:[#allocation10_spill] sm:$0xff] %v2943_v28  ;;  %v2945_v29 = vpop.f32.mrb[5].mxu0  ;;  %v2947_v30 = vpop.f32.mrb[5].mxu1 }
 0x100   :  { %4049 = vst [vmem:[#allocation11_spill] sm:$0xff] %v2945_v29  ;;  %4050 = vst [vmem:[#allocation12_spill] sm:$0xff] %v2947_v30  ;;  %v299_v31 = vpop.f32.mrb[6].mxu0  ;;  %v2949_v32 = vpop.f32.mrb[6].mxu1 }
 0x101   :  { %4051 = vst [vmem:[#allocation13_spill] sm:$0xff] %v2949_v32  ;;  %v2952_v34 = vpop.f32.mrb[7].mxu0  ;;  %v2954_v37 = vpop.f32.mrb[7].mxu1 }
 0x102   :  { %4052 = vst [vmem:[#allocation14_spill] sm:$0xff] %v2952_v34  ;;  %4053 = vst [vmem:[#allocation15_spill] sm:$0xff] %v2954_v37 }
 0x106   :  { %v305_v59 = vpop.f32.mrb[8].mxu0  ;;  %v2971_v3 = vpop.f32.mrb[8].mxu1 }
 0x107   :  { %4063 = vst [vmem:[#allocation19_spill] sm:$0xff] %v2971_v3  ;;  %v2973_v4 = vpop.f32.mrb[9].mxu0  ;;  %v2975_v7 = vpop.f32.mrb[9].mxu1  ;;  %v2979_v33 = vsel %vm43_vm0, %v299_v31, %v305_v59  ;;  %v2987_v45 = vsel %vm43_vm0, %v305_v59, %v299_v31 }
 0x108   :  { %4064 = vst [vmem:[#allocation20_spill] sm:$0xff] %v2973_v4  ;;  %4065 = vst [vmem:[#allocation21_spill] sm:$0xff] %v2975_v7  ;;  %v309_v1 = vpop.f32.mrb[10].mxu0  ;;  %v2993_v36 = vpop.f32.mrb[10].mxu1 }
 0x109   :  { %4066 = vst [vmem:[#allocation22_spill] sm:$0xff] %v2979_v33  ;;  %4067 = vst [vmem:[#allocation23_spill] sm:$0xff] %v2987_v45  ;;  %v3011_v14 = vpop.f32.mrb[11].mxu0  ;;  %v3013_v45 = vpop.f32.mrb[11].mxu1  ;;  %v3017_v33 = vsel %vm43_vm0, %v295_v27, %v309_v1  ;;  %v3025_v31 = vsel %vm43_vm0, %v309_v1, %v295_v27 }
 0x10a   :  { %4068 = vst [vmem:[#allocation24_spill] sm:$0xff] %v2993_v36  ;;  %4069 = vst [vmem:[#allocation25_spill] sm:$0xff] %v3011_v14 }
 0x10b   :  { %4070 = vst [vmem:[#allocation26_spill] sm:$0xff] %v3013_v45  ;;  %4071 = vst [vmem:[#allocation27_spill] sm:$0xff] %v3017_v33 }
 0x10c   :  { %4072 = vst [vmem:[#allocation28_spill] sm:$0xff] %v3025_v31 }
 0x10e   :  { %v315_v59 = vpop.f32.mrb[12].mxu0  ;;  %v3047_v44 = vpop.f32.mrb[12].mxu1 }
 0x10f   :  { %4073 = vst [vmem:[#allocation29_spill] sm:$0xff] %v3047_v44  ;;  %v3049_v31 = vpop.f32.mrb[13].mxu0  ;;  %v3051_v7 = vpop.f32.mrb[13].mxu1  ;;  %v3055_v37 = vsel %vm43_vm0, %v289_v19, %v315_v59  ;;  %v3063_v4 = vsel %vm43_vm0, %v315_v59, %v289_v19 }
 0x110   :  { %4074 = vst [vmem:[#allocation30_spill] sm:$0xff] %v3049_v31  ;;  %4075 = vst [vmem:[#allocation31_spill] sm:$0xff] %v3051_v7  ;;  %v319_v34 = vpop.f32.mrb[14].mxu0  ;;  %v3069_v3 = vpop.f32.mrb[14].mxu1 }
 0x111   :  { %4076 = vst [vmem:[#allocation32_spill] sm:$0xff] %v3063_v4  ;;  %4077 = vst [vmem:[#allocation33_spill] sm:$0xff] %v3069_v3  ;;  %v3087_v27 = vpop.f32.mrb[15].mxu0  ;;  %v3089_v4 = vpop.f32.mrb[15].mxu1  ;;  %v397_v32 = vsel %vm43_vm0, %v2917_v15, %v319_v34  ;;  %v399_v1 = vsel %vm2959_vm1, %v2919_v16, %v3069_v3  ;;  %v3101_v19 = vsel %vm43_vm0, %v319_v34, %v2917_v15  ;;  %v23_v15 = vshra.s32 %v2928_v21, 7 }
 0x112   :  { %4078 = vst [vmem:[#allocation34_spill] sm:$0xff] %v3087_v27  ;;  %4079 = vst [vmem:[#allocation35_spill] sm:$0xff] %v3089_v4  ;;  %v398_v45 = vsel %vm2963_vm2, %v2921_v17, %v3087_v27  ;;  %v400_v30 = vsel %vm2967_vm3, %v2923_v18, %v3089_v4  ;;  %v25_v17 = vshra.s32 %v2935_v24, 7  ;;  %v24_v34 = vshra.s32 %v2938_v25, 7  ;;  %v4086_v18 = vld [vmem:[#allocation9_spill] sm:$0xff] }
 0x113   :  { %4080 = vst [vmem:[#allocation36_spill] sm:$0xff] %v3101_v19  ;;  %vm27_vm4 = vcmp.eq.s32.totalorder %v23_v15, 2  ;;  %vm2527_vm0 = vmmov 0  }
 0x114   :  { %vm29_vm5 = vcmp.eq.s32.totalorder %v25_v17, 2  ;;  %vm28_vm6 = vcmp.eq.s32.totalorder %v24_v34, 2 }
 0x116   :  { %v691_v59 = vpop.f32.mrb[16].mxu0  ;;  %v732_v16 = vpop.f32.mrb[16].mxu1 }
 0x117   :  { %v739_v3 = vadd.f32 %v691_v59, %v397_v32  ;;  %v741_v19 = vadd.f32 %v732_v16, %v399_v1  ;;  %v693_v14 = vpop.f32.mrb[17].mxu0  ;;  %v734_v29 = vpop.f32.mrb[17].mxu1  ;;  %v2525_v16 = vmov 0.5   ;;  %v4087_v4 = vld [vmem:[#allocation31_spill] sm:$0xff] }
 0x118   :  { %v740_v36 = vadd.f32 %v693_v14, %v398_v45  ;;  %v742_v28 = vadd.f32 %v734_v29, %v400_v30  ;;  %v695_v33 = vpop.f32.mrb[18].mxu0  ;;  %v736_v7 = vpop.f32.mrb[18].mxu1  ;;  %v3126_v32 = vsel %vm27_vm4, 1.0, %v2525_v16  ;;  %v3128_v14 = vsel %vm29_vm5, 1.0, %v2525_v16 }
 0x119   :  { %2408 = vtanh.f32 %v739_v3  ;;  %v696_v23 = vpop.f32.mrb[19].mxu0  ;;  %v737_v31 = vpop.f32.mrb[19].mxu1  ;;  %v3130_v30 = vsel %vm27_vm4, 0.0, %v2525_v16  ;;  %v3135_v24 = vsel %vm29_vm5, 0.0, %v2525_v16  ;;  %v3138_v17 = vsel %vm28_vm6, 0.0, %v2525_v16 }
 0x11a   :  { %2410 = vtanh.f32 %v741_v19  ;;  %v3132_v23 = vsel %vm28_vm6, 1.0, %v2525_v16  ;;  %v26_v19 = vshra.s32 %v2941_v26, 7  ;;  %v4088_v27 = vsel %vm2967_vm3, %v4086_v18, %v4087_v4  ;;  %v4099_v18 = vld [vmem:[#allocation12_spill] sm:$0xff]  ;;  %v4100_v4 = vld [vmem:[#allocation26_spill] sm:$0xff] }
 0x11b   :  { %2412 = vtanh.f32 %v740_v36 }
 0x11c   :  { %2414 = vtanh.f32 %v742_v28  ;;  %vm30_vm7 = vcmp.eq.s32.totalorder %v26_v19, 2  ;;  %v3156_v28 = vld [vmem:[%s3986_s0] sm:$0xff]  ;;  %v4083_v19 = vsel %vm2959_vm1, %v2925_v20, %v3047_v44 }
 0x11d   :  { %vm761_vm8 = vcmp.gt.f32.partialorder %v3156_v28, 0.5  ;;  %v4089_v28 = vld [vmem:[#allocation3_spill] sm:$0xff] }
 0x11e   :  { %vm2117_vm9 = vmpackc.low %vm761_vm8, %vm761_vm8 }
 0x123   :  { %v2409_v29 = vpop.eup %2408 }
 0x124   :  { %v2411_v21 = vpop.eup %2410  ;;  %v747_v3 = vmul.f32 %v2409_v29, %v3126_v32  ;;  %v3148_v29 = vsel %vm30_vm7, 1.0, %v2525_v16 }
 0x125   :  { %v2413_v36 = vpop.eup %2412  ;;  %v749_v25 = vmul.f32 %v2411_v21, %v3128_v14 }
 0x126   :  { %v751_v7 = vadd.f32 %v747_v3, %v3130_v30  ;;  %v748_v33 = vmul.f32 %v2413_v36, %v3132_v23  ;;  %v2415_v34 = vpop.eup %2414  ;;  %v3151_v3 = vsel %vm30_vm7, 0.0, %v2525_v16 }
 0x127   :  { %v753_v45 = vadd.f32 %v749_v25, %v3135_v24  ;;  %v750_v21 = vmul.f32 %v2415_v34, %v3148_v29 }
 0x128   :  { %v752_v31 = vadd.f32 %v748_v33, %v3138_v17  ;;  %v4082_v33 = vld [vmem:[#allocation3_spill] sm:$0xff] }
 0x129   :  { %v756_v1 = vmul.f32 %v753_v45, %v751_v7  ;;  %v754_v26 = vadd.f32 %v750_v21, %v3151_v3  ;;  %v4081_v7 = vmov 0  }
 0x12a   :  { %v755_v59 = vmul.f32 0.0, %v752_v31 }
 0x12c   :  { %v3145_v15 = vadd.f32 %v756_v1, %v755_v59 }
 0x12e   :  { %2416 = vtanh.f32 %v3145_v15 }
 0x138   :  { %v2417_v36 = vpop.eup %2416 }
 0x139   :  { %v3159_v25 = vmul.f32 %v2417_v36, %v754_v26  ;;  %v4084_v26 = vld [vmem:[#allocation30_spill] sm:$0xff] }
 0x13a   :  { %v4085_v36 = vsel %vm2963_vm2, %v2930_v22, %v4084_v26  ;;  %v4101_v26 = vsel %vm2967_vm3, %v4099_v18, %v4100_v4  ;;  %v4113_v18 = vld [vmem:[#allocation21_spill] sm:$0xff] }
 0x13b   :  { %v2118_v16 = vpack.c.bf16 %v3159_v25, %v3159_v25 }
 0x13d   :  { %2119 = vmatmul.mubr.msk.bf16.vlgmr.msra.gmra.mrb[20].mxu0 %vm2117_vm9, %v2118_v16  ;;  %2122 = vmatmul.mubr.msk.bf16.vlgmr.msra.gmra.mrb[20].mxu1 %vm2117_vm9, %v2118_v16 }
 0x13e   :  { %886 = vmatpush1.bf16.msra.mxu0 %v2674_v38  ;;  %927 = vmatpush1.bf16.msra.mxu1 %v2679_v39 }
 0x13f   :  { %887 = vmatprep.subr.bf16.mxu0 %v2686_v40  ;;  %928 = vmatprep.subr.bf16.mxu1 %v2691_v41 }
 0x140   :  { %917 = vmatprep.mubr.bf16.mxu0 %v4081_v7  ;;  %958 = vmatprep.mubr.bf16.mxu1 %v4081_v7 }
 0x142   :  { %888 = vmatpush1.bf16.msra.mxu0 %v2696_v42  ;;  %929 = vmatpush1.bf16.msra.mxu1 %v2701_v43 }
 0x143   :  { %889 = vmatprep.subr.bf16.mxu0 %v2714_v46  ;;  %930 = vmatprep.subr.bf16.mxu1 %v2721_v47 }
 0x146   :  { %890 = vmatpush1.bf16.msra.mxu0 %v2728_v49  ;;  %931 = vmatpush1.bf16.msra.mxu1 %v2733_v50 }
 0x147   :  { %891 = vmatprep.subr.bf16.mxu0 %v2740_v51  ;;  %932 = vmatprep.subr.bf16.mxu1 %v2747_v52 }
 0x14a   :  { %892 = vmatpush1.bf16.msra.mxu0 %v2752_v53  ;;  %933 = vmatpush1.bf16.msra.mxu1 %v2757_v54 }
 0x14b   :  { %893 = vmatprep.subr.bf16.mxu0 %v2772_v57  ;;  %934 = vmatprep.subr.bf16.mxu1 %v2777_v58 }
 0x14e   :  { %894 = vmatpush1.bf16.msra.mxu0 %v2786_v60  ;;  %935 = vmatpush1.bf16.msra.mxu1 %v2791_v61 }
 0x14f   :  { %895 = vmatprep.subr.bf16.mxu0 %v2798_v62  ;;  %936 = vmatprep.subr.bf16.mxu1 %v2803_v63 }
 0x152   :  { %896 = vmatpush1.bf16.msra.mxu0 %v2808_v0  ;;  %937 = vmatpush1.bf16.msra.mxu1 %v2815_v2 }
 0x153   :  { %897 = vmatprep.subr.bf16.mxu0 %v2828_v5  ;;  %938 = vmatprep.subr.bf16.mxu1 %v2833_v6 }
 0x156   :  { %898 = vmatpush1.bf16.msra.mxu0 %v2842_v8  ;;  %939 = vmatpush1.bf16.msra.mxu1 %v2847_v9 }
 0x157   :  { %899 = vmatprep.subr.bf16.mxu0 %v2854_v10  ;;  %940 = vmatprep.subr.bf16.mxu1 %v2859_v11 }
 0x15a   :  { %900 = vmatpush1.bf16.msra.mxu0 %v2866_v12  ;;  %941 = vmatpush1.bf16.msra.mxu1 %v2871_v13 }
 0x15b   :  { %999 = vmatprep.subr.bf16.mxu0 %v2664_v35  ;;  %1040 = vmatprep.subr.bf16.mxu1 %v4082_v33 }
 0x210   :  { %v805_v45 = vpop.f32.mrb[20].mxu0  ;;  %v846_v31 = vpop.f32.mrb[20].mxu1 }
 0x211   :  { %v853_v1 = vadd.f32 %v805_v45, %v3055_v37  ;;  %v855_v59 = vadd.f32 %v846_v31, %v4083_v19  ;;  %v807_v34 = vpop.f32.mrb[21].mxu0  ;;  %v848_v21 = vpop.f32.mrb[21].mxu1 }
 0x212   :  { %v854_v16 = vadd.f32 %v807_v34, %v4085_v36  ;;  %v856_v37 = vadd.f32 %v848_v21, %v4088_v27  ;;  %v809_v45 = vpop.f32.mrb[22].mxu0  ;;  %v850_v48 = vpop.f32.mrb[22].mxu1 }
 0x213   :  { %2418 = vtanh.f32 %v853_v1  ;;  %v810_v33 = vpop.f32.mrb[23].mxu0  ;;  %v851_v20 = vpop.f32.mrb[23].mxu1 }
 0x214   :  { %2420 = vtanh.f32 %v855_v59  ;;  %v874_v20 = vld [vmem:[%s3986_s0 + $0x8] sm:$0xff]  ;;  %v763_v33 = vsel %vm761_vm8, %v3145_v15, 0.0  ;;  %v762_v15 = vsel %vm761_vm8, %v3159_v25, 0.0 }
 0x215   :  { %2422 = vtanh.f32 %v854_v16  ;;  %vm875_vm10 = vcmp.gt.f32.partialorder %v874_v20, 0.5 }
 0x216   :  { %2424 = vtanh.f32 %v856_v37 }
 0x21d   :  { %v2419_v31 = vpop.eup %2418 }
 0x21e   :  { %v2421_v19 = vpop.eup %2420  ;;  %v861_v44 = vmul.f32 %v2419_v31, %v3126_v32 }
 0x21f   :  { %v2423_v55 = vpop.eup %2422  ;;  %v863_v34 = vmul.f32 %v2421_v19, %v3128_v14 }
 0x220   :  { %v865_v36 = vadd.f32 %v861_v44, %v3130_v30  ;;  %v862_v22 = vmul.f32 %v2423_v55, %v3132_v23  ;;  %v2425_v55 = vpop.eup %2424 }
 0x221   :  { %v867_v27 = vadd.f32 %v863_v34, %v3135_v24  ;;  %v864_v16 = vmul.f32 %v2425_v55, %v3148_v29  ;;  %v4093_v55 = vld [vmem:[#allocation24_spill] sm:$0xff] }
 0x222   :  { %v866_v48 = vadd.f32 %v862_v22, %v3138_v17  ;;  %v764_v22 = vsel %vm761_vm8, %v3159_v25, -10000.0 }
 0x223   :  { %v870_v1 = vmul.f32 %v867_v27, %v865_v36  ;;  %v868_v37 = vadd.f32 %v864_v16, %v3151_v3  ;;  %v765_v19 = vmax.f32 %v764_v22, -10000.0 }
 0x224   :  { %v869_v59 = vmul.f32 %v866_v48, %v763_v33 }
 0x226   :  { %v871_v21 = vadd.f32 %v870_v1, %v869_v59 }
 0x228   :  { %2426 = vtanh.f32 %v871_v21  ;;  %v3229_v44 = vsel %vm875_vm10, %v871_v21, %v763_v33  ;;  %v4090_v33 = vld [vmem:[#allocation27_spill] sm:$0xff]  ;;  %v4092_v21 = vld [vmem:[#allocation10_spill] sm:$0xff] }
 0x229   :  { %v4094_v16 = vsel %vm2959_vm1, %v4092_v21, %v4093_v55 }
 0x232   :  { %v2427_v45 = vpop.eup %2426 }
 0x233   :  { %v873_v31 = vmul.f32 %v2427_v45, %v868_v37 }
 0x235   :  { %v3239_v34 = vsel %vm875_vm10, %v873_v31, %v762_v15  ;;  %v878_v36 = vsel %vm875_vm10, %v873_v31, -10000.0  ;;  %v4097_v15 = vld [vmem:[#allocation25_spill] sm:$0xff] }
 0x236   :  { %v3241_v27 = vmax.f32 %v765_v19, %v878_v36  ;;  %v884_v48 = vpack.c.bf16 %v3239_v34, %v3239_v34  ;;  %v4096_v19 = vld [vmem:[#allocation11_spill] sm:$0xff] }
 0x237   :  { %v4098_v36 = vsel %vm2963_vm2, %v4096_v19, %v4097_v15 }
 0x238   :  { %918 = vmatmul.mubr.bf16.vlgmr.msra.gmra.mrb[24].mxu0 %v884_v48  ;;  %959 = vmatmul.mubr.bf16.vlgmr.msra.gmra.mrb[24].mxu1 %v884_v48 }
 0x239   :  { %1000 = vmatpush1.bf16.msra.mxu0 %v2674_v38  ;;  %1041 = vmatpush1.bf16.msra.mxu1 %v2679_v39 }
 0x23a   :  { %1001 = vmatprep.subr.bf16.mxu0 %v2686_v40  ;;  %1042 = vmatprep.subr.bf16.mxu1 %v2691_v41 }
 0x23b   :  { %1031 = vmatprep.mubr.bf16.mxu0 %v4081_v7  ;;  %1072 = vmatprep.mubr.bf16.mxu1 %v4081_v7 }
 0x23d   :  { %1002 = vmatpush1.bf16.msra.mxu0 %v2696_v42  ;;  %1043 = vmatpush1.bf16.msra.mxu1 %v2701_v43 }
 0x23e   :  { %1003 = vmatprep.subr.bf16.mxu0 %v2714_v46  ;;  %1044 = vmatprep.subr.bf16.mxu1 %v2721_v47 }
 0x241   :  { %1004 = vmatpush1.bf16.msra.mxu0 %v2728_v49  ;;  %1045 = vmatpush1.bf16.msra.mxu1 %v2733_v50 }
 0x242   :  { %1005 = vmatprep.subr.bf16.mxu0 %v2740_v51  ;;  %1046 = vmatprep.subr.bf16.mxu1 %v2747_v52 }
 0x245   :  { %1006 = vmatpush1.bf16.msra.mxu0 %v2752_v53  ;;  %1047 = vmatpush1.bf16.msra.mxu1 %v2757_v54 }
 0x246   :  { %1007 = vmatprep.subr.bf16.mxu0 %v2772_v57  ;;  %1048 = vmatprep.subr.bf16.mxu1 %v2777_v58 }
 0x249   :  { %1008 = vmatpush1.bf16.msra.mxu0 %v2786_v60  ;;  %1049 = vmatpush1.bf16.msra.mxu1 %v2791_v61 }
 0x24a   :  { %1009 = vmatprep.subr.bf16.mxu0 %v2798_v62  ;;  %1050 = vmatprep.subr.bf16.mxu1 %v2803_v63 }
 0x24d   :  { %1010 = vmatpush1.bf16.msra.mxu0 %v2808_v0  ;;  %1051 = vmatpush1.bf16.msra.mxu1 %v2815_v2 }
 0x24e   :  { %1011 = vmatprep.subr.bf16.mxu0 %v2828_v5  ;;  %1052 = vmatprep.subr.bf16.mxu1 %v2833_v6 }
 0x251   :  { %1012 = vmatpush1.bf16.msra.mxu0 %v2842_v8  ;;  %1053 = vmatpush1.bf16.msra.mxu1 %v2847_v9 }
 0x252   :  { %1013 = vmatprep.subr.bf16.mxu0 %v2854_v10  ;;  %1054 = vmatprep.subr.bf16.mxu1 %v2859_v11 }
 0x255   :  { %1014 = vmatpush1.bf16.msra.mxu0 %v2866_v12  ;;  %1055 = vmatpush1.bf16.msra.mxu1 %v2871_v13 }
 0x256   :  { %1113 = vmatprep.subr.bf16.mxu0 %v2664_v35  ;;  %1154 = vmatprep.subr.bf16.mxu1 %v4089_v28 }
 0x30b   :  { %v919_v25 = vpop.f32.mrb[24].mxu0  ;;  %v960_v20 = vpop.f32.mrb[24].mxu1 }
 0x30c   :  { %v967_v1 = vadd.f32 %v919_v25, %v4090_v33  ;;  %v969_v22 = vadd.f32 %v960_v20, %v4094_v16  ;;  %v921_v37 = vpop.f32.mrb[25].mxu0  ;;  %v962_v45 = vpop.f32.mrb[25].mxu1 }
 0x30d   :  { %v968_v48 = vadd.f32 %v921_v37, %v4098_v36  ;;  %v970_v25 = vadd.f32 %v962_v45, %v4101_v26  ;;  %v923_v33 = vpop.f32.mrb[26].mxu0  ;;  %v964_v59 = vpop.f32.mrb[26].mxu1 }
 0x30e   :  { %2428 = vtanh.f32 %v967_v1  ;;  %v924_v28 = vpop.f32.mrb[27].mxu0  ;;  %v965_v21 = vpop.f32.mrb[27].mxu1 }
 0x30f   :  { %2430 = vtanh.f32 %v969_v22  ;;  %v988_v28 = vld [vmem:[%s3986_s0 + $0x10] sm:$0xff] }
 0x310   :  { %2432 = vtanh.f32 %v968_v48  ;;  %vm989_vm11 = vcmp.gt.f32.partialorder %v988_v28, 0.5 }
 0x311   :  { %2434 = vtanh.f32 %v970_v25 }
 0x318   :  { %v2429_v20 = vpop.eup %2428 }
 0x319   :  { %v2431_v16 = vpop.eup %2430  ;;  %v975_v55 = vmul.f32 %v2429_v20, %v3126_v32 }
 0x31a   :  { %v2433_v31 = vpop.eup %2432  ;;  %v977_v37 = vmul.f32 %v2431_v16, %v3128_v14 }
 0x31b   :  { %v979_v36 = vadd.f32 %v975_v55, %v3130_v30  ;;  %v976_v19 = vmul.f32 %v2433_v31, %v3132_v23  ;;  %v2435_v55 = vpop.eup %2434 }
 0x31c   :  { %v981_v26 = vadd.f32 %v977_v37, %v3135_v24  ;;  %v978_v31 = vmul.f32 %v2435_v55, %v3148_v29 }
 0x31d   :  { %v980_v1 = vadd.f32 %v976_v19, %v3138_v17 }
 0x31e   :  { %v984_v59 = vmul.f32 %v981_v26, %v979_v36  ;;  %v982_v48 = vadd.f32 %v978_v31, %v3151_v3  ;;  %v4103_v26 = vld [vmem:[#allocation22_spill] sm:$0xff] }
 0x31f   :  { %v983_v21 = vmul.f32 %v980_v1, %v3229_v44 }
 0x321   :  { %v985_v22 = vadd.f32 %v984_v59, %v983_v21  ;;  %v4105_v59 = vld [vmem:[#allocation13_spill] sm:$0xff]  ;;  %v4106_v21 = vld [vmem:[#allocation19_spill] sm:$0xff] }
 0x323   :  { %2436 = vtanh.f32 %v985_v22  ;;  %v3306_v45 = vsel %vm989_vm11, %v985_v22, %v3229_v44  ;;  %v4102_v44 = vld [vmem:[#allocation3_spill] sm:$0xff]  ;;  %v4107_v22 = vsel %vm2959_vm1, %v4105_v59, %v4106_v21 }
 0x32d   :  { %v2437_v25 = vpop.eup %2436 }
 0x32e   :  { %v987_v19 = vmul.f32 %v2437_v25, %v982_v48 }
 0x330   :  { %v3311_v33 = vsel %vm989_vm11, %v987_v19, %v3239_v34  ;;  %v3313_v20 = vsel %vm989_vm11, %v987_v19, -10000.0  ;;  %v4109_v19 = vld [vmem:[#allocation14_spill] sm:$0xff] }
 0x331   :  { %v998_v37 = vpack.c.bf16 %v3311_v33, %v3311_v33 }
 0x333   :  { %1032 = vmatmul.mubr.bf16.vlgmr.msra.gmra.mrb[28].mxu0 %v998_v37  ;;  %1073 = vmatmul.mubr.bf16.vlgmr.msra.gmra.mrb[28].mxu1 %v998_v37  ;;  %v4110_v37 = vld [vmem:[#allocation20_spill] sm:$0xff] }
 0x334   :  { %1114 = vmatpush1.bf16.msra.mxu0 %v2674_v38  ;;  %1155 = vmatpush1.bf16.msra.mxu1 %v2679_v39  ;;  %v4111_v16 = vsel %vm2963_vm2, %v4109_v19, %v4110_v37 }
 0x335   :  { %1115 = vmatprep.subr.bf16.mxu0 %v2686_v40  ;;  %1156 = vmatprep.subr.bf16.mxu1 %v2691_v41 }
 0x336   :  { %1145 = vmatprep.mubr.bf16.mxu0 %v4081_v7  ;;  %1186 = vmatprep.mubr.bf16.mxu1 %v4081_v7 }
 0x338   :  { %1116 = vmatpush1.bf16.msra.mxu0 %v2696_v42  ;;  %1157 = vmatpush1.bf16.msra.mxu1 %v2701_v43 }
 0x339   :  { %1117 = vmatprep.subr.bf16.mxu0 %v2714_v46  ;;  %1158 = vmatprep.subr.bf16.mxu1 %v2721_v47 }
 0x33c   :  { %1118 = vmatpush1.bf16.msra.mxu0 %v2728_v49  ;;  %1159 = vmatpush1.bf16.msra.mxu1 %v2733_v50 }
 0x33d   :  { %1119 = vmatprep.subr.bf16.mxu0 %v2740_v51  ;;  %1160 = vmatprep.subr.bf16.mxu1 %v2747_v52 }
 0x340   :  { %1120 = vmatpush1.bf16.msra.mxu0 %v2752_v53  ;;  %1161 = vmatpush1.bf16.msra.mxu1 %v2757_v54 }
 0x341   :  { %1121 = vmatprep.subr.bf16.mxu0 %v2772_v57  ;;  %1162 = vmatprep.subr.bf16.mxu1 %v2777_v58 }
 0x344   :  { %1122 = vmatpush1.bf16.msra.mxu0 %v2786_v60  ;;  %1163 = vmatpush1.bf16.msra.mxu1 %v2791_v61 }
 0x345   :  { %1123 = vmatprep.subr.bf16.mxu0 %v2798_v62  ;;  %1164 = vmatprep.subr.bf16.mxu1 %v2803_v63 }
 0x348   :  { %1124 = vmatpush1.bf16.msra.mxu0 %v2808_v0  ;;  %1165 = vmatpush1.bf16.msra.mxu1 %v2815_v2 }
 0x349   :  { %1125 = vmatprep.subr.bf16.mxu0 %v2828_v5  ;;  %1166 = vmatprep.subr.bf16.mxu1 %v2833_v6 }
 0x34c   :  { %1126 = vmatpush1.bf16.msra.mxu0 %v2842_v8  ;;  %1167 = vmatpush1.bf16.msra.mxu1 %v2847_v9 }
 0x34d   :  { %1127 = vmatprep.subr.bf16.mxu0 %v2854_v10  ;;  %1168 = vmatprep.subr.bf16.mxu1 %v2859_v11 }
 0x350   :  { %1128 = vmatpush1.bf16.msra.mxu0 %v2866_v12  ;;  %1169 = vmatpush1.bf16.msra.mxu1 %v2871_v13 }
 0x351   :  { %1227 = vmatprep.subr.bf16.mxu0 %v2664_v35  ;;  %1268 = vmatprep.subr.bf16.mxu1 %v4102_v44  ;;  %v4112_v44 = vld [vmem:[#allocation15_spill] sm:$0xff] }
 0x352   :  { %v4114_v4 = vsel %vm2967_vm3, %v4112_v44, %v4113_v18 }
 0x406   :  { %v1033_v34 = vpop.f32.mrb[28].mxu0  ;;  %v1074_v36 = vpop.f32.mrb[28].mxu1 }
 0x407   :  { %v1081_v1 = vadd.f32 %v1033_v34, %v4103_v26  ;;  %v1083_v55 = vadd.f32 %v1074_v36, %v4107_v22  ;;  %v1035_v31 = vpop.f32.mrb[29].mxu0  ;;  %v1076_v48 = vpop.f32.mrb[29].mxu1 }
 0x408   :  { %v1082_v35 = vadd.f32 %v1035_v31, %v4111_v16  ;;  %v1084_v34 = vadd.f32 %v1076_v48, %v4114_v4  ;;  %v1037_v26 = vpop.f32.mrb[30].mxu0  ;;  %v1078_v15 = vpop.f32.mrb[30].mxu1 }
 0x409   :  { %2438 = vtanh.f32 %v1081_v1  ;;  %v1038_v28 = vpop.f32.mrb[31].mxu0  ;;  %v1079_v59 = vpop.f32.mrb[31].mxu1  ;;  %v1102_v1 = vld [vmem:[%s3986_s0 + $0x18] sm:$0xff] }
 0x40a   :  { %2440 = vtanh.f32 %v1083_v55  ;;  %vm1103_vm12 = vcmp.gt.f32.partialorder %v1102_v1, 0.5 }
 0x40b   :  { %2442 = vtanh.f32 %v1082_v35 }
 0x40c   :  { %2444 = vtanh.f32 %v1084_v34 }
 0x413   :  { %v2439_v36 = vpop.eup %2438 }
 0x414   :  { %v2441_v22 = vpop.eup %2440  ;;  %v1089_v25 = vmul.f32 %v2439_v36, %v3126_v32 }
 0x415   :  { %v2443_v21 = vpop.eup %2442  ;;  %v1091_v16 = vmul.f32 %v2441_v22, %v3128_v14  ;;  %v4115_v22 = vmax.f32 %v3241_v27, %v3313_v20 }
 0x416   :  { %v1093_v31 = vadd.f32 %v1089_v25, %v3130_v30  ;;  %v1090_v56 = vmul.f32 %v2443_v21, %v3132_v23  ;;  %v2445_v25 = vpop.eup %2444 }
 0x417   :  { %v1095_v4 = vadd.f32 %v1091_v16, %v3135_v24  ;;  %v1092_v21 = vmul.f32 %v2445_v25, %v3148_v29 }
 0x418   :  { %v1094_v15 = vadd.f32 %v1090_v56, %v3138_v17 }
 0x419   :  { %v1098_v28 = vmul.f32 %v1095_v4, %v1093_v31  ;;  %v1096_v35 = vadd.f32 %v1092_v21, %v3151_v3 }
 0x41a   :  { %v1097_v59 = vmul.f32 %v1094_v15, %v3306_v45 }
 0x41c   :  { %v1099_v55 = vadd.f32 %v1098_v28, %v1097_v59 }
 0x41e   :  { %2446 = vtanh.f32 %v1099_v55  ;;  %v3380_v48 = vsel %vm1103_vm12, %v1099_v55, %v3306_v45 }
 0x428   :  { %v2447_v34 = vpop.eup %2446 }
 0x429   :  { %v1101_v56 = vmul.f32 %v2447_v34, %v1096_v35  ;;  %v3487_v35 = vld [vmem:[%s3985_s2 + $0x8] ss:$16 sps:$4 sm:$0xff]   ;;  %v3493_v34 = vld [vmem:[%s3985_s2 + $0x24] ss:$16 sps:$4 sm:$0xff]  }
 0x42b   :  { %v3385_v26 = vsel %vm1103_vm12, %v1101_v56, %v3311_v33  ;;  %v1106_v36 = vsel %vm1103_vm12, %v1101_v56, -10000.0  ;;  %v1216_v33 = vld [vmem:[%s3986_s0 + $0x20] sm:$0xff]  ;;  %v3499_v56 = vld [vmem:[%s3985_s2 + $0x2c] ss:$16 sps:$4 sm:$0xff]  }
 0x42c   :  { %v3390_v16 = vmax.f32 %v4115_v22, %v1106_v36  ;;  %v1112_v45 = vpack.c.bf16 %v3385_v26, %v3385_v26  ;;  %vm1217_vm13 = vcmp.gt.f32.partialorder %v1216_v33, 0.5  ;;  %v3513_v36 = vld [vmem:[%s3985_s2 + $0x28] ss:$16 sps:$4 sm:$0xff]   ;;  %v3519_v22 = vld [vmem:[%s3985_s2 + $0x44] ss:$16 sps:$4 sm:$0xff]  }
 0x42d   :  { %v4127_v33 = vld [vmem:[#allocation10_spill] sm:$0xff] }
 0x42e   :  { %1146 = vmatmul.mubr.bf16.vlgmr.msra.gmra.mrb[32].mxu0 %v1112_v45  ;;  %1187 = vmatmul.mubr.bf16.vlgmr.msra.gmra.mrb[32].mxu1 %v1112_v45  ;;  %v3525_v45 = vld [vmem:[%s3985_s2 + $0x4c] ss:$16 sps:$4 sm:$0xff]  }
 0x42f   :  { %1228 = vmatpush1.bf16.msra.mxu0 %v2674_v38  ;;  %1269 = vmatpush1.bf16.msra.mxu1 %v2679_v39  ;;  %v3429_v38 = vld [vmem:[%s3985_s2 + $0x4] ss:$16 sps:$4 sm:$0xff]   ;;  %v3435_v39 = vld [vmem:[%s3985_s2 + $0xc] ss:$16 sps:$4 sm:$0xff]  }
 0x430   :  { %1229 = vmatprep.subr.bf16.mxu0 %v2686_v40  ;;  %1270 = vmatprep.subr.bf16.mxu1 %v2691_v41 }
 0x431   :  { %1259 = vmatprep.mubr.bf16.mxu0 %v4081_v7  ;;  %1300 = vmatprep.mubr.bf16.mxu1 %v4081_v7 }
 0x433   :  { %1230 = vmatpush1.bf16.msra.mxu0 %v2696_v42  ;;  %1271 = vmatpush1.bf16.msra.mxu1 %v2701_v43  ;;  %v4116_v42 = vld [vmem:[#allocation23_spill] sm:$0xff] }
 0x434   :  { %1231 = vmatprep.subr.bf16.mxu0 %v2714_v46  ;;  %1272 = vmatprep.subr.bf16.mxu1 %v2721_v47  ;;  %v4118_v47 = vld [vmem:[#allocation19_spill] sm:$0xff] }
 0x437   :  { %1232 = vmatpush1.bf16.msra.mxu0 %v2728_v49  ;;  %1273 = vmatpush1.bf16.msra.mxu1 %v2733_v50  ;;  %v4119_v49 = vld [vmem:[#allocation13_spill] sm:$0xff] }
 0x438   :  { %1233 = vmatprep.subr.bf16.mxu0 %v2740_v51  ;;  %1274 = vmatprep.subr.bf16.mxu1 %v2747_v52  ;;  %v4120_v50 = vsel %vm2959_vm1, %v4118_v47, %v4119_v49  ;;  %v3555_v47 = vld [vmem:[%s3985_s2 + $0x60] ss:$16 sps:$4 sm:$0xff]   ;;  %v3561_v49 = vld [vmem:[%s3985_s2 + $0x68] ss:$16 sps:$4 sm:$0xff]  }
 0x43b   :  { %1234 = vmatpush1.bf16.msra.mxu0 %v2752_v53  ;;  %1275 = vmatpush1.bf16.msra.mxu1 %v2757_v54 }
 0x43c   :  { %1235 = vmatprep.subr.bf16.mxu0 %v2772_v57  ;;  %1276 = vmatprep.subr.bf16.mxu1 %v2777_v58  ;;  %v4122_v57 = vsel %vm2963_vm2, %v4110_v37, %v4109_v19 }
 0x43f   :  { %1236 = vmatpush1.bf16.msra.mxu0 %v2786_v60  ;;  %1277 = vmatpush1.bf16.msra.mxu1 %v2791_v61  ;;  %v4124_v61 = vsel %vm2967_vm3, %v4113_v18, %v4112_v44 }
 0x440   :  { %1237 = vmatprep.subr.bf16.mxu0 %v2798_v62  ;;  %1278 = vmatprep.subr.bf16.mxu1 %v2803_v63 }
 0x443   :  { %1238 = vmatpush1.bf16.msra.mxu0 %v2808_v0  ;;  %1279 = vmatpush1.bf16.msra.mxu1 %v2815_v2 }
 0x444   :  { %1239 = vmatprep.subr.bf16.mxu0 %v2828_v5  ;;  %1280 = vmatprep.subr.bf16.mxu1 %v2833_v6 }
 0x447   :  { %1240 = vmatpush1.bf16.msra.mxu0 %v2842_v8  ;;  %1281 = vmatpush1.bf16.msra.mxu1 %v2847_v9 }
 0x448   :  { %1241 = vmatprep.subr.bf16.mxu0 %v2854_v10  ;;  %1282 = vmatprep.subr.bf16.mxu1 %v2859_v11 }
 0x44b   :  { %1242 = vmatpush1.bf16.msra.mxu0 %v2866_v12  ;;  %1283 = vmatpush1.bf16.msra.mxu1 %v2871_v13 }
 0x44c   :  { %1341 = vmatprep.subr.bf16.mxu0 %v3429_v38  ;;  %1382 = vmatprep.subr.bf16.mxu1 %v3435_v39 }
 0x501   :  { %v1147_v40 = vpop.f32.mrb[32].mxu0  ;;  %v1188_v41 = vpop.f32.mrb[32].mxu1 }
 0x502   :  { %v1195_v43 = vadd.f32 %v1147_v40, %v4116_v42  ;;  %v1197_v51 = vadd.f32 %v1188_v41, %v4120_v50  ;;  %v1149_v52 = vpop.f32.mrb[33].mxu0  ;;  %v1190_v53 = vpop.f32.mrb[33].mxu1  ;;  %v3531_v40 = vld [vmem:[%s3985_s2 + $0x40] ss:$16 sps:$4 sm:$0xff]   ;;  %v3537_v41 = vld [vmem:[%s3985_s2 + $0x48] ss:$16 sps:$4 sm:$0xff]  }
 0x503   :  { %v1196_v58 = vadd.f32 %v1149_v52, %v4122_v57  ;;  %v1198_v62 = vadd.f32 %v1190_v53, %v4124_v61  ;;  %v1151_v63 = vpop.f32.mrb[34].mxu0  ;;  %v1192_v0 = vpop.f32.mrb[34].mxu1  ;;  %v3543_v42 = vld [vmem:[%s3985_s2 + $0x64] ss:$16 sps:$4 sm:$0xff]   ;;  %v3579_v52 = vld [vmem:[%s3985_s2 + $0x80] ss:$16 sps:$4 sm:$0xff]  }
 0x504   :  { %2448 = vtanh.f32 %v1195_v43  ;;  %v1152_v2 = vpop.f32.mrb[35].mxu0  ;;  %v1193_v5 = vpop.f32.mrb[35].mxu1  ;;  %v3549_v43 = vld [vmem:[%s3985_s2 + $0x6c] ss:$16 sps:$4 sm:$0xff]   ;;  %v3567_v50 = vld [vmem:[%s3985_s2 + $0x84] ss:$16 sps:$4 sm:$0xff]  }
 0x505   :  { %2450 = vtanh.f32 %v1197_v51  ;;  %v3573_v51 = vld [vmem:[%s3985_s2 + $0x8c] ss:$16 sps:$4 sm:$0xff]   ;;  %v3585_v53 = vld [vmem:[%s3985_s2 + $0x88] ss:$16 sps:$4 sm:$0xff]   ;;  %v3591_v57 = vld [vmem:[%s3985_s2 + $0xa4] ss:$16 sps:$4 sm:$0xff]  }
 0x506   :  { %2452 = vtanh.f32 %v1196_v58  ;;  %v3597_v58 = vld [vmem:[%s3985_s2 + $0xac] ss:$16 sps:$4 sm:$0xff]   ;;  %v3603_v61 = vld [vmem:[%s3985_s2 + $0xa0] ss:$16 sps:$4 sm:$0xff]   ;;  %v3615_v63 = vld [vmem:[%s3985_s2 + $0xc4] ss:$16 sps:$4 sm:$0xff]  }
 0x507   :  { %2454 = vtanh.f32 %v1198_v62  ;;  %v3609_v62 = vld [vmem:[%s3985_s2 + $0xa8] ss:$16 sps:$4 sm:$0xff]   ;;  %v3621_v0 = vld [vmem:[%s3985_s2 + $0xcc] ss:$16 sps:$4 sm:$0xff]   ;;  %v3627_v2 = vld [vmem:[%s3985_s2 + $0xc0] ss:$16 sps:$4 sm:$0xff]  }
 0x508   :  { %v3633_v5 = vld [vmem:[%s3985_s2 + $0xc8] ss:$16 sps:$4 sm:$0xff]  }
 0x50e   :  { %v2449_v6 = vpop.eup %2448 }
 0x50f   :  { %v2451_v8 = vpop.eup %2450  ;;  %v1203_v9 = vmul.f32 %v2449_v6, %v3126_v32  ;;  %v3639_v6 = vld [vmem:[%s3985_s2 + $0xe4] ss:$16 sps:$4 sm:$0xff]  }
 0x510   :  { %v2453_v10 = vpop.eup %2452  ;;  %v1205_v11 = vmul.f32 %v2451_v8, %v3128_v14  ;;  %v3645_v8 = vld [vmem:[%s3985_s2 + $0xec] ss:$16 sps:$4 sm:$0xff]  }
 0x511   :  { %v1207_v12 = vadd.f32 %v1203_v9, %v3130_v30  ;;  %v1204_v13 = vmul.f32 %v2453_v10, %v3132_v23  ;;  %v2455_v31 = vpop.eup %2454  ;;  %v3651_v9 = vld [vmem:[%s3985_s2 + $0xe0] ss:$16 sps:$4 sm:$0xff]   ;;  %v3657_v10 = vld [vmem:[%s3985_s2 + $0xe8] ss:$16 sps:$4 sm:$0xff]  }
 0x512   :  { %v1209_v18 = vadd.f32 %v1205_v11, %v3135_v24  ;;  %v1206_v4 = vmul.f32 %v2455_v31, %v3148_v29 }
 0x513   :  { %v1208_v27 = vadd.f32 %v1204_v13, %v3138_v17  ;;  %v4125_v13 = vld [vmem:[#allocation28_spill] sm:$0xff] }
 0x514   :  { %v1212_v20 = vmul.f32 %v1209_v18, %v1207_v12  ;;  %v1210_v15 = vadd.f32 %v1206_v4, %v3151_v3  ;;  %v4129_v4 = vld [vmem:[#allocation25_spill] sm:$0xff] }
 0x515   :  { %v1211_v19 = vmul.f32 %v1208_v27, %v3380_v48  ;;  %v4126_v27 = vld [vmem:[#allocation24_spill] sm:$0xff] }
 0x517   :  { %v1213_v37 = vadd.f32 %v1212_v20, %v1211_v19  ;;  %v4128_v20 = vsel %vm2959_vm1, %v4126_v27, %v4127_v33 }
 0x519   :  { %2456 = vtanh.f32 %v1213_v37  ;;  %v3465_v44 = vsel %vm1217_vm13, %v1213_v37, %v3380_v48  ;;  %v3481_v48 = vld [vmem:[%s3985_s2] ss:$16 sps:$4 sm:$0xff]  }
 0x523   :  { %v2457_v1 = vpop.eup %2456 }
 0x524   :  { %v1215_v28 = vmul.f32 %v2457_v1, %v1210_v15  ;;  %v4130_v15 = vld [vmem:[#allocation11_spill] sm:$0xff] }
 0x525   :  { %v4131_v1 = vsel %vm2963_vm2, %v4129_v4, %v4130_v15 }
 0x526   :  { %v3470_v59 = vsel %vm1217_vm13, %v1215_v28, %v3385_v26  ;;  %v3472_v55 = vsel %vm1217_vm13, %v1215_v28, -10000.0  ;;  %v3507_v26 = vld [vmem:[%s3985_s2 + $0x20] ss:$16 sps:$4 sm:$0xff]   ;;  %v4133_v28 = vld [vmem:[#allocation12_spill] sm:$0xff] }
 0x527   :  { %v1226_v25 = vpack.c.bf16 %v3470_v59, %v3470_v59 }
 0x529   :  { %1260 = vmatmul.mubr.bf16.vlgmr.msra.gmra.mrb[36].mxu0 %v1226_v25  ;;  %1301 = vmatmul.mubr.bf16.vlgmr.msra.gmra.mrb[36].mxu1 %v1226_v25 }
 0x52a   :  { %1342 = vmatpush1.bf16.msra.mxu0 %v3481_v48  ;;  %1383 = vmatpush1.bf16.msra.mxu1 %v3487_v35 }
 0x52b   :  { %1343 = vmatprep.subr.bf16.mxu0 %v3493_v34  ;;  %1384 = vmatprep.subr.bf16.mxu1 %v3499_v56 }
 0x52c   :  { %1373 = vmatprep.mubr.bf16.mxu0 %v4081_v7  ;;  %1414 = vmatprep.mubr.bf16.mxu1 %v4081_v7 }
 0x52e   :  { %1344 = vmatpush1.bf16.msra.mxu0 %v3507_v26  ;;  %1385 = vmatpush1.bf16.msra.mxu1 %v3513_v36 }
 0x52f   :  { %1345 = vmatprep.subr.bf16.mxu0 %v3519_v22  ;;  %1386 = vmatprep.subr.bf16.mxu1 %v3525_v45 }
 0x532   :  { %1346 = vmatpush1.bf16.msra.mxu0 %v3531_v40  ;;  %1387 = vmatpush1.bf16.msra.mxu1 %v3537_v41 }
 0x533   :  { %1347 = vmatprep.subr.bf16.mxu0 %v3543_v42  ;;  %1388 = vmatprep.subr.bf16.mxu1 %v3549_v43 }
 0x536   :  { %1348 = vmatpush1.bf16.msra.mxu0 %v3555_v47  ;;  %1389 = vmatpush1.bf16.msra.mxu1 %v3561_v49 }
 0x537   :  { %1349 = vmatprep.subr.bf16.mxu0 %v3567_v50  ;;  %1390 = vmatprep.subr.bf16.mxu1 %v3573_v51 }
 0x53a   :  { %1350 = vmatpush1.bf16.msra.mxu0 %v3579_v52  ;;  %1391 = vmatpush1.bf16.msra.mxu1 %v3585_v53 }
 0x53b   :  { %1351 = vmatprep.subr.bf16.mxu0 %v3591_v57  ;;  %1392 = vmatprep.subr.bf16.mxu1 %v3597_v58 }
 0x53e   :  { %1352 = vmatpush1.bf16.msra.mxu0 %v3603_v61  ;;  %1393 = vmatpush1.bf16.msra.mxu1 %v3609_v62 }
 0x53f   :  { %1353 = vmatprep.subr.bf16.mxu0 %v3615_v63  ;;  %1394 = vmatprep.subr.bf16.mxu1 %v3621_v0 }
 0x542   :  { %1354 = vmatpush1.bf16.msra.mxu0 %v3627_v2  ;;  %1395 = vmatpush1.bf16.msra.mxu1 %v3633_v5 }
 0x543   :  { %1355 = vmatprep.subr.bf16.mxu0 %v3639_v6  ;;  %1396 = vmatprep.subr.bf16.mxu1 %v3645_v8 }
 0x546   :  { %1356 = vmatpush1.bf16.msra.mxu0 %v3651_v9  ;;  %1397 = vmatpush1.bf16.msra.mxu1 %v3657_v10 }
 0x547   :  { %1455 = vmatprep.subr.bf16.mxu0 %v3429_v38  ;;  %1496 = vmatprep.subr.bf16.mxu1 %v3435_v39  ;;  %v4132_v39 = vld [vmem:[#allocation26_spill] sm:$0xff] }
 0x548   :  { %v4134_v25 = vsel %vm2967_vm3, %v4132_v39, %v4133_v28 }
 0x5fc   :  { %v1261_v11 = vpop.f32.mrb[36].mxu0  ;;  %v1302_v12 = vpop.f32.mrb[36].mxu1 }
 0x5fd   :  { %v1309_v18 = vadd.f32 %v1261_v11, %v4125_v13  ;;  %v1311_v19 = vadd.f32 %v1302_v12, %v4128_v20  ;;  %v1263_v37 = vpop.f32.mrb[37].mxu0  ;;  %v1304_v31 = vpop.f32.mrb[37].mxu1 }
 0x5fe   :  { %v1310_v38 = vadd.f32 %v1263_v37, %v4131_v1  ;;  %v1312_v11 = vadd.f32 %v1304_v31, %v4134_v25  ;;  %v1265_v13 = vpop.f32.mrb[38].mxu0  ;;  %v1306_v21 = vpop.f32.mrb[38].mxu1 }
 0x5ff   :  { %2458 = vtanh.f32 %v1309_v18  ;;  %v1266_v46 = vpop.f32.mrb[39].mxu0  ;;  %v1307_v27 = vpop.f32.mrb[39].mxu1 }
 0x600   :  { %2460 = vtanh.f32 %v1311_v19  ;;  %v1330_v46 = vld [vmem:[%s3986_s0 + $0x28] sm:$0xff] }
 0x601   :  { %2462 = vtanh.f32 %v1310_v38  ;;  %vm1331_vm14 = vcmp.gt.f32.partialorder %v1330_v46, 0.5 }
 0x602   :  { %2464 = vtanh.f32 %v1312_v11 }
 0x609   :  { %v2459_v12 = vpop.eup %2458 }
 0x60a   :  { %v2461_v33 = vpop.eup %2460  ;;  %v1317_v20 = vmul.f32 %v2459_v12, %v3126_v32 }
 0x60b   :  { %v2463_v54 = vpop.eup %2462  ;;  %v1319_v37 = vmul.f32 %v2461_v33, %v3128_v14  ;;  %v4135_v33 = vmax.f32 %v3390_v16, %v3472_v55 }
 0x60c   :  { %v1321_v4 = vadd.f32 %v1317_v20, %v3130_v30  ;;  %v1318_v15 = vmul.f32 %v2463_v54, %v3132_v23  ;;  %v2465_v39 = vpop.eup %2464 }
 0x60d   :  { %v1323_v31 = vadd.f32 %v1319_v37, %v3135_v24  ;;  %v1320_v54 = vmul.f32 %v2465_v39, %v3148_v29 }
 0x60e   :  { %v1322_v21 = vadd.f32 %v1318_v15, %v3138_v17 }
 0x60f   :  { %v1326_v18 = vmul.f32 %v1323_v31, %v1321_v4  ;;  %v1324_v28 = vadd.f32 %v1320_v54, %v3151_v3  ;;  %v2376_v54 = vld [vmem:[%s3987_s3] sm:$0xff]  }
 0x610   :  { %v1325_v19 = vmul.f32 %v1322_v21, %v3465_v44 }
 0x612   :  { %v1327_v1 = vadd.f32 %v1326_v18, %v1325_v19 }
 0x614   :  { %2466 = vtanh.f32 %v1327_v1  ;;  %v3689_v38 = vsel %vm1331_vm14, %v1327_v1, %v3465_v44 }
 0x61e   :  { %v2467_v25 = vpop.eup %2466 }
 0x61f   :  { %v1329_v11 = vmul.f32 %v2467_v25, %v1324_v28  ;;  %v1562_v28 = vld [vmem:[%s3986_s0 + $0x40] sm:$0xff] }
 0x621   :  { %v3694_v13 = vsel %vm1331_vm14, %v1329_v11, %v3470_v59  ;;  %v1334_v27 = vsel %vm1331_vm14, %v1329_v11, -10000.0  ;;  %v4136_v59 = vld [vmem:[#allocation32_spill] sm:$0xff] }
 0x622   :  { %v1340_v12 = vpack.c.bf16 %v3694_v13, %v3694_v13  ;;  %v3701_v20 = vmax.f32 %v4135_v33, %v1334_v27  ;;  %v1565_v33 = vld [vmem:[%s3986_s0 + $0x50] sm:$0xff] }
 0x624   :  { %1374 = vmatmul.mubr.bf16.vlgmr.msra.gmra.mrb[40].mxu0 %v1340_v12  ;;  %1415 = vmatmul.mubr.bf16.vlgmr.msra.gmra.mrb[40].mxu1 %v1340_v12  ;;  %v2377_v12 = vld [vmem:[%s3987_s3 + $0x8] sm:$0xff]  }
 0x625   :  { %1456 = vmatpush1.bf16.msra.mxu0 %v3481_v48  ;;  %1497 = vmatpush1.bf16.msra.mxu1 %v3487_v35  ;;  %v4138_v35 = vld [vmem:[#allocation29_spill] sm:$0xff] }
 0x626   :  { %1457 = vmatprep.subr.bf16.mxu0 %v3493_v34  ;;  %1498 = vmatprep.subr.bf16.mxu1 %v3499_v56  ;;  %v4139_v34 = vld [vmem:[#allocation7_spill] sm:$0xff] }
 0x627   :  { %1487 = vmatprep.mubr.bf16.mxu0 %v4081_v7  ;;  %1528 = vmatprep.mubr.bf16.mxu1 %v4081_v7  ;;  %v2526_v7 = vmov 0.0   ;;  %v4140_v56 = vsel %vm2959_vm1, %v4138_v35, %v4139_v34  ;;  %v2379_v35 = vld [vmem:[%s3987_s3 + $0x18] sm:$0xff]   ;;  %v1569_v34 = vld [vmem:[%s3986_s0 + $0x60] sm:$0xff] }
 0x629   :  { %1458 = vmatpush1.bf16.msra.mxu0 %v3507_v26  ;;  %1499 = vmatpush1.bf16.msra.mxu1 %v3513_v36 }
 0x62a   :  { %1459 = vmatprep.subr.bf16.mxu0 %v3519_v22  ;;  %1500 = vmatprep.subr.bf16.mxu1 %v3525_v45 }
 0x62d   :  { %1460 = vmatpush1.bf16.msra.mxu0 %v3531_v40  ;;  %1501 = vmatpush1.bf16.msra.mxu1 %v3537_v41  ;;  %v4142_v40 = vld [vmem:[#allocation30_spill] sm:$0xff]  ;;  %v4143_v41 = vld [vmem:[#allocation8_spill] sm:$0xff] }
 0x62e   :  { %1461 = vmatprep.subr.bf16.mxu0 %v3543_v42  ;;  %1502 = vmatprep.subr.bf16.mxu1 %v3549_v43  ;;  %v4144_v42 = vsel %vm2963_vm2, %v4142_v40, %v4143_v41  ;;  %v2381_v40 = vld [vmem:[%s3987_s3 + $0x28] sm:$0xff]   ;;  %v1573_v41 = vld [vmem:[%s3986_s0 + $0x70] sm:$0xff] }
 0x631   :  { %1462 = vmatpush1.bf16.msra.mxu0 %v3555_v47  ;;  %1503 = vmatpush1.bf16.msra.mxu1 %v3561_v49  ;;  %v4145_v47 = vld [vmem:[#allocation31_spill] sm:$0xff]  ;;  %v4146_v49 = vld [vmem:[#allocation9_spill] sm:$0xff] }
 0x632   :  { %1463 = vmatprep.subr.bf16.mxu0 %v3567_v50  ;;  %1504 = vmatprep.subr.bf16.mxu1 %v3573_v51  ;;  %v4147_v50 = vsel %vm2967_vm3, %v4145_v47, %v4146_v49  ;;  %v1575_v47 = vld [vmem:[%s3986_s0 + $0x78] sm:$0xff] }
 0x635   :  { %1464 = vmatpush1.bf16.msra.mxu0 %v3579_v52  ;;  %1505 = vmatpush1.bf16.msra.mxu1 %v3585_v53 }
 0x636   :  { %1465 = vmatprep.subr.bf16.mxu0 %v3591_v57  ;;  %1506 = vmatprep.subr.bf16.mxu1 %v3597_v58 }
 0x639   :  { %1466 = vmatpush1.bf16.msra.mxu0 %v3603_v61  ;;  %1507 = vmatpush1.bf16.msra.mxu1 %v3609_v62 }
 0x63a   :  { %1467 = vmatprep.subr.bf16.mxu0 %v3615_v63  ;;  %1508 = vmatprep.subr.bf16.mxu1 %v3621_v0 }
 0x63d   :  { %1468 = vmatpush1.bf16.msra.mxu0 %v3627_v2  ;;  %1509 = vmatpush1.bf16.msra.mxu1 %v3633_v5 }
 0x63e   :  { %1469 = vmatprep.subr.bf16.mxu0 %v3639_v6  ;;  %1510 = vmatprep.subr.bf16.mxu1 %v3645_v8 }
 0x641   :  { %1470 = vmatpush1.bf16.msra.mxu0 %v3651_v9  ;;  %1511 = vmatpush1.bf16.msra.mxu1 %v3657_v10  ;;  %v1444_v10 = vld [vmem:[%s3986_s0 + $0x30] sm:$0xff] }
 0x642   :  { %2192 = vmatprep.subr.bf16.mxu0 %v2526_v7  ;;  %2212 = vmatprep.subr.bf16.mxu1 %v2526_v7  ;;  %vm1445_vm15 = vcmp.gt.f32.partialorder %v1444_v10, 0.5  ;;  %v2405_v10 = vld [vmem:[%s3987_s3 + $0xa8] sm:$0xff]  }
 0x6f7   :  { %v1375_v16 = vpop.f32.mrb[40].mxu0  ;;  %v1416_v44 = vpop.f32.mrb[40].mxu1 }
 0x6f8   :  { %v1423_v55 = vadd.f32 %v1375_v16, %v4136_v59  ;;  %v1425_v26 = vadd.f32 %v1416_v44, %v4140_v56  ;;  %v1377_v36 = vpop.f32.mrb[41].mxu0  ;;  %v1418_v22 = vpop.f32.mrb[41].mxu1  ;;  %v2378_v44 = vld [vmem:[%s3987_s3 + $0x10] sm:$0xff]   ;;  %v1567_v59 = vld [vmem:[%s3986_s0 + $0x58] sm:$0xff] }
 0x6f9   :  { %v1424_v43 = vadd.f32 %v1377_v36, %v4144_v42  ;;  %v1426_v51 = vadd.f32 %v1418_v22, %v4147_v50  ;;  %v1379_v52 = vpop.f32.mrb[42].mxu0  ;;  %v1420_v53 = vpop.f32.mrb[42].mxu1  ;;  %v1571_v36 = vld [vmem:[%s3986_s0 + $0x68] sm:$0xff]  ;;  %v2383_v50 = vld [vmem:[%s3987_s3 + $0x38] sm:$0xff]  }
 0x6fa   :  { %2468 = vtanh.f32 %v1423_v55  ;;  %v1380_v57 = vpop.f32.mrb[43].mxu0  ;;  %v1421_v58 = vpop.f32.mrb[43].mxu1  ;;  %v2384_v52 = vld [vmem:[%s3987_s3 + $0x40] sm:$0xff]   ;;  %v2385_v53 = vld [vmem:[%s3987_s3 + $0x48] sm:$0xff]  }
 0x6fb   :  { %2470 = vtanh.f32 %v1425_v26  ;;  %v2380_v26 = vld [vmem:[%s3987_s3 + $0x20] sm:$0xff]   ;;  %v2386_v57 = vld [vmem:[%s3987_s3 + $0x50] sm:$0xff]   ;;  %v2387_v58 = vld [vmem:[%s3987_s3 + $0x58] sm:$0xff]  }
 0x6fc   :  { %2472 = vtanh.f32 %v1424_v43  ;;  %v2382_v43 = vld [vmem:[%s3987_s3 + $0x30] sm:$0xff]  }
 0x6fd   :  { %2474 = vtanh.f32 %v1426_v51 }
 0x704   :  { %v2469_v61 = vpop.eup %2468 }
 0x705   :  { %v2471_v62 = vpop.eup %2470  ;;  %v1431_v63 = vmul.f32 %v2469_v61, %v3126_v32  ;;  %v2388_v61 = vld [vmem:[%s3987_s3 + $0x60] sm:$0xff]  }
 0x706   :  { %v2473_v0 = vpop.eup %2472  ;;  %v1433_v2 = vmul.f32 %v2471_v62, %v3128_v14  ;;  %v2389_v62 = vld [vmem:[%s3987_s3 + $0x68] sm:$0xff]  }
 0x707   :  { %v1435_v5 = vadd.f32 %v1431_v63, %v3130_v30  ;;  %v1432_v6 = vmul.f32 %v2473_v0, %v3132_v23  ;;  %v2475_v21 = vpop.eup %2474  ;;  %v2390_v63 = vld [vmem:[%s3987_s3 + $0x70] sm:$0xff]   ;;  %v2391_v0 = vld [vmem:[%s3987_s3 + $0x78] sm:$0xff]  }
 0x708   :  { %v1437_v8 = vadd.f32 %v1433_v2, %v3135_v24  ;;  %v1434_v46 = vmul.f32 %v2475_v21, %v3148_v29  ;;  %v2400_v2 = vld [vmem:[%s3987_s3 + $0x80] sm:$0xff]  }
 0x709   :  { %v1436_v9 = vadd.f32 %v1432_v6, %v3138_v17  ;;  %v2402_v6 = vld [vmem:[%s3987_s3 + $0x90] sm:$0xff]  }
 0x70a   :  { %v1440_v37 = vmul.f32 %v1437_v8, %v1435_v5  ;;  %v1438_v18 = vadd.f32 %v1434_v46, %v3151_v3  ;;  %v2401_v5 = vld [vmem:[%s3987_s3 + $0x88] sm:$0xff]   ;;  %v2403_v8 = vld [vmem:[%s3987_s3 + $0x98] sm:$0xff]   ;;  %v4149_v46 = vld [vmem:[#allocation33_spill] sm:$0xff] }
 0x70b   :  { %v1439_v4 = vmul.f32 %v1436_v9, %v3689_v38  ;;  %v2404_v9 = vld [vmem:[%s3987_s3 + $0xa0] sm:$0xff]  }
 0x70d   :  { %v1441_v15 = vadd.f32 %v1440_v37, %v1439_v4 }
 0x70f   :  { %2476 = vtanh.f32 %v1441_v15  ;;  %v3764_v31 = vsel %vm1445_vm15, %v1441_v15, %v3689_v38  ;;  %v1563_v38 = vld [vmem:[%s3986_s0 + $0x48] sm:$0xff] }
 0x710   :  { %v4148_v15 = vld [vmem:[#allocation36_spill] sm:$0xff] }
 0x719   :  { %v2477_v19 = vpop.eup %2476 }
 0x71a   :  { %v1443_v1 = vmul.f32 %v2477_v19, %v1438_v18  ;;  %v4150_v18 = vld [vmem:[#allocation4_spill] sm:$0xff] }
 0x71b   :  { %v4151_v19 = vsel %vm2959_vm1, %v4149_v46, %v4150_v18 }
 0x71c   :  { %v1446_v39 = vsel %vm1445_vm15, %v1443_v1, %v3694_v13  ;;  %v3778_v25 = vsel %vm1445_vm15, %v1443_v1, -10000.0  ;;  %v1564_v13 = vmax.f32 %v1562_v28, %v1563_v38  ;;  %v4152_v28 = vld [vmem:[#allocation34_spill] sm:$0xff]  ;;  %v4153_v38 = vld [vmem:[#allocation5_spill] sm:$0xff] }
 0x71d   :  { %v1454_v11 = vpack.c.bf16 %v1446_v39, %v1446_v39  ;;  %v1449_v27 = vmax.f32 %v3701_v20, %v3778_v25  ;;  %v2395_v20 = vld [vmem:[%s3987_s3 + $0xd8] sm:$0xff]   ;;  %v2396_v25 = vld [vmem:[%s3987_s3 + $0xe0] sm:$0xff]  }
 0x71e   :  { %v1566_v16 = vmax.f32 %v1564_v13, %v1565_v33  ;;  %v4156_v33 = vld [vmem:[#allocation6_spill] sm:$0xff] }
 0x71f   :  { %1488 = vmatmul.mubr.bf16.vlgmr.msra.gmra.mrb[44].mxu0 %v1454_v11  ;;  %1529 = vmatmul.mubr.bf16.vlgmr.msra.gmra.mrb[44].mxu1 %v1454_v11  ;;  %v4154_v11 = vsel %vm2963_vm2, %v4152_v28, %v4153_v38  ;;  %vm2047_vm2 = vcmask 15360  }
 0x720   :  { %2193 = vmatpush3.bf16.msra.mxu0 %v2376_v54  ;;  %2208 = vmatprep.mubr.msk.bf16.mxu0 %vm2527_vm0, %v2526_v7  ;;  %v1568_v55 = vmax.f32 %v1566_v16, %v1567_v59 }
 0x721   :  { %2194 = vmatprep.subr.bf16.mxu0 %v2526_v7  ;;  %2228 = vmatprep.mubr.msk.bf16.mxu1 %vm2527_vm0, %v2526_v7 }
 0x722   :  { %v1570_v56 = vmax.f32 %v1568_v55, %v1569_v34  ;;  %2213 = vmatpush3.bf16.msra.mxu1 %v2384_v52 }
 0x723   :  { %2214 = vmatprep.subr.bf16.mxu1 %v2526_v7 }
 0x724   :  { %2195 = vmatpush3.bf16.msra.mxu0 %v2377_v12  ;;  %v1572_v22 = vmax.f32 %v1570_v56, %v1571_v36  ;;  %v4155_v12 = vld [vmem:[#allocation35_spill] sm:$0xff] }
 0x725   :  { %2196 = vmatprep.subr.bf16.mxu0 %v2526_v7  ;;  %v4157_v16 = vsel %vm2967_vm3, %v4155_v12, %v4156_v33 }
 0x726   :  { %v1574_v42 = vmax.f32 %v1572_v22, %v1573_v41  ;;  %2215 = vmatpush3.bf16.msra.mxu1 %v2385_v53 }
 0x727   :  { %2216 = vmatprep.subr.bf16.mxu1 %v2526_v7 }
 0x728   :  { %2197 = vmatpush3.bf16.msra.mxu0 %v2378_v44  ;;  %v1576_v49 = vmax.f32 %v1574_v42, %v1575_v47  ;;  %v4158_v47 = vlaneseq }
 0x729   :  { %2198 = vmatprep.subr.bf16.mxu0 %v2526_v7 }
 0x72a   :  { %v1579_v51 = vpack.c.bf16 %v1576_v49, %v1576_v49  ;;  %2217 = vmatpush3.bf16.msra.mxu1 %v2386_v57  ;;  %v3915_v49 = vshrl.u32 %v4158_v47, 7 }
 0x72b   :  { %2218 = vmatprep.subr.bf16.mxu1 %v2526_v7 }
 0x72c   :  { %2199 = vmatpush3.bf16.msra.mxu0 %v2379_v35 }
 0x72d   :  { %2200 = vmatprep.subr.bf16.mxu0 %v2526_v7 }
 0x72e   :  { %2219 = vmatpush3.bf16.msra.mxu1 %v2387_v58 }
 0x72f   :  { %2220 = vmatprep.subr.bf16.mxu1 %v2526_v7 }
 0x730   :  { %2201 = vmatpush3.bf16.msra.mxu0 %v2380_v26 }
 0x731   :  { %2202 = vmatprep.subr.bf16.mxu0 %v2526_v7 }
 0x732   :  { %2221 = vmatpush3.bf16.msra.mxu1 %v2388_v61 }
 0x733   :  { %2222 = vmatprep.subr.bf16.mxu1 %v2526_v7 }
 0x734   :  { %2203 = vmatpush3.bf16.msra.mxu0 %v2381_v40 }
 0x735   :  { %2204 = vmatprep.subr.bf16.mxu0 %v2526_v7 }
 0x736   :  { %2223 = vmatpush3.bf16.msra.mxu1 %v2389_v62 }
 0x737   :  { %2224 = vmatprep.subr.bf16.mxu1 %v2526_v7 }
 0x738   :  { %2205 = vmatpush3.bf16.msra.mxu0 %v2382_v43 }
 0x739   :  { %2206 = vmatprep.subr.bf16.mxu0 %v2526_v7 }
 0x73a   :  { %2225 = vmatpush3.bf16.msra.mxu1 %v2390_v63 }
 0x73b   :  { %2226 = vmatprep.subr.bf16.mxu1 %v2526_v7 }
 0x73c   :  { %2207 = vmatpush3.bf16.msra.mxu0 %v2383_v50 }
 0x73d   :  { %2232 = vmatprep.subr.bf16.mxu0 %v2526_v7 }
 0x73e   :  { %2227 = vmatpush3.bf16.msra.mxu1 %v2391_v0 }
 0x73f   :  { %2209 = vmatmul.mubr.bf16.vlgmr.msra.gmra.mrb[48].mxu0 %v1579_v51  ;;  %2252 = vmatprep.subr.bf16.mxu1 %v2526_v7 }
 0x740   :  { %2248 = vmatprep.mubr.msk.bf16.mxu0 %vm2527_vm0, %v2526_v7  ;;  %2233 = vmatpush3.bf16.msra.mxu0 %v2400_v2 }
 0x741   :  { %2234 = vmatprep.subr.bf16.mxu0 %v2526_v7 }
 0x744   :  { %2235 = vmatpush3.bf16.msra.mxu0 %v2401_v5 }
 0x745   :  { %2236 = vmatprep.subr.bf16.mxu0 %v2526_v7 }
 0x748   :  { %2237 = vmatpush3.bf16.msra.mxu0 %v2402_v6 }
 0x749   :  { %2238 = vmatprep.subr.bf16.mxu0 %v2526_v7 }
 0x74c   :  { %2239 = vmatpush3.bf16.msra.mxu0 %v2403_v8  ;;  %v2394_v8 = vld [vmem:[%s3987_s3 + $0xd0] sm:$0xff]  }
 0x74d   :  { %2240 = vmatprep.subr.bf16.mxu0 %v2526_v7 }
 0x750   :  { %2241 = vmatpush3.bf16.msra.mxu0 %v2404_v9  ;;  %v2398_v9 = vld [vmem:[%s3987_s3 + $0xf0] sm:$0xff]  }
 0x751   :  { %2242 = vmatprep.subr.bf16.mxu0 %v2526_v7 }
 0x754   :  { %2243 = vmatpush3.bf16.msra.mxu0 %v2405_v10  ;;  %v2399_v10 = vld [vmem:[%s3987_s3 + $0xf8] sm:$0xff]  }
 0x755   :  { %2244 = vmatprep.subr.bf16.mxu0 %v2526_v7 }
 0x7f2   :  { %v1489_v37 = vpop.f32.mrb[44].mxu0  ;;  %v1530_v4 = vpop.f32.mrb[44].mxu1 }
 0x7f3   :  { %v1537_v21 = vadd.f32 %v1489_v37, %v4148_v15  ;;  %v1539_v1 = vadd.f32 %v1530_v4, %v4151_v19  ;;  %v1491_v39 = vpop.f32.mrb[45].mxu0  ;;  %v1532_v54 = vpop.f32.mrb[45].mxu1  ;;  %v2406_v4 = vld [vmem:[%s3987_s3 + $0xb0] sm:$0xff]   ;;  %v2407_v15 = vld [vmem:[%s3987_s3 + $0xb8] sm:$0xff]  }
 0x7f4   :  { %v1538_v13 = vadd.f32 %v1491_v39, %v4154_v11  ;;  %v1540_v44 = vadd.f32 %v1532_v54, %v4157_v16  ;;  %v1493_v59 = vpop.f32.mrb[46].mxu0  ;;  %v1534_v48 = vpop.f32.mrb[46].mxu1  ;;  %2245 = vmatpush3.bf16.msra.mxu0 %v2406_v4  ;;  %v1927_v11 = vsub.s32 3, %v3915_v49 }
 0x7f5   :  { %2478 = vtanh.f32 %v1537_v21  ;;  %v1494_v55 = vpop.f32.mrb[47].mxu0  ;;  %v1535_v35 = vpop.f32.mrb[47].mxu1  ;;  %2246 = vmatprep.subr.bf16.mxu0 %v2526_v7  ;;  %v1708_v21 = vsub.s32 1, %v3915_v49  ;;  %v1818_v59 = vsub.s32 2, %v3915_v49 }
 0x7f6   :  { %2480 = vtanh.f32 %v1539_v1 }
 0x7f7   :  { %2482 = vtanh.f32 %v1538_v13 }
 0x7f8   :  { %2484 = vtanh.f32 %v1540_v44  ;;  %2247 = vmatpush3.bf16.msra.mxu0 %v2407_v15 }
 0x7ff   :  { %v2479_v34 = vpop.eup %2478 }
 0x800   :  { %v2481_v56 = vpop.eup %2480  ;;  %v1545_v45 = vmul.f32 %v2479_v34, %v3126_v32  ;;  %v1577_v32 = vld [vmem:[%s3987_s3 + $0x100] sm:$0xf] }
 0x801   :  { %v2483_v26 = vpop.eup %2482  ;;  %v1547_v36 = vmul.f32 %v2481_v56, %v3128_v14  ;;  %v3920_v14 = vunpack.c.l.bf16 %v1577_v32 }
 0x802   :  { %v1549_v60 = vadd.f32 %v1545_v45, %v3130_v30  ;;  %v1546_v22 = vmul.f32 %v2483_v26, %v3132_v23  ;;  %v1598_v30 = vsub.s32 0, %v3915_v49  ;;  %v2485_v23 = vpop.eup %2484 }
 0x803   :  { %v1551_v40 = vadd.f32 %v1547_v36, %v3135_v24  ;;  %v1548_v24 = vmul.f32 %v2485_v23, %v3148_v29  ;;  %v2392_v29 = vld [vmem:[%s3987_s3 + $0xc0] sm:$0xff]   ;;  %v1709_v46 = vrot.slane %v3920_v14, %v1708_v21  ;;  %v1819_v48 = vrot.slane %v3920_v14, %v1818_v59 }
 0x804   :  { %v1550_v41 = vadd.f32 %v1546_v22, %v3138_v17  ;;  %v1599_v17 = vrot.slane %v3920_v14, %v1598_v30 }
 0x805   :  { %v1554_v42 = vmul.f32 %v1551_v40, %v1549_v60  ;;  %v1552_v57 = vadd.f32 %v1548_v24, %v3151_v3  ;;  %v2393_v3 = vld [vmem:[%s3987_s3 + $0xc8] sm:$0xff]  }
 0x806   :  { %v1553_v43 = vmul.f32 %v1550_v41, %v3764_v31  ;;  %v1558_v31 = vld [vmem:[%s3986_s0 + $0x38] sm:$0xff] }
 0x807   :  { %vm1559_vm1 = vcmp.gt.f32.partialorder %v1558_v31, 0.5 }
 0x808   :  { %v1555_v50 = vadd.f32 %v1554_v42, %v1553_v43 }
 0x80a   :  { %2486 = vtanh.f32 %v1555_v50 }
 0x812   :  { %v1682_v51 = vpop.f32.mrb[48].mxu0 }
 0x813   :  { %v1683_v52 = vadd.f32 %v1682_v51, %v1599_v17  ;;  %v2210_v53 = vpop.f32.mrb[49].mxu0 }
 0x814   :  { %v2487_v58 = vpop.eup %2486  ;;  %v1685_v61 = vpop.f32.mrb[50].mxu0 }
 0x815   :  { %v1688_v62 = vmax.f32 %v1683_v52, 0.0  ;;  %v2211_v63 = vpop.f32.mrb[51].mxu0  ;;  %v1557_v0 = vmul.f32 %v2487_v58, %v1552_v57 }
 0x817   :  { %v1689_v2 = vpack.c.bf16 %v1688_v62, %v1688_v62  ;;  %v1560_v5 = vsel %vm1559_vm1, %v1557_v0, -10000.0 }
 0x818   :  { %v1561_v6 = vmax.f32 %v1449_v27, %v1560_v5  ;;  %v2397_v27 = vld [vmem:[%s3987_s3 + $0xe8] sm:$0xff]  }
 0x819   :  { %2229 = vmatmul.mubr.bf16.vlgmr.msra.gmra.mrb[48].mxu1 %v1689_v2 }
 0x81a   :  { %2253 = vmatpush3.bf16.msra.mxu1 %v2392_v29  ;;  %2268 = vmatprep.mubr.msk.bf16.mxu1 %vm2527_vm0, %v2526_v7  ;;  %v1908_v37 = vpack.c.bf16 %v1561_v6, %v1561_v6 }
 0x81b   :  { %2254 = vmatprep.subr.bf16.mxu1 %v2526_v7 }
 0x81e   :  { %2255 = vmatpush3.bf16.msra.mxu1 %v2393_v3 }
 0x81f   :  { %2256 = vmatprep.subr.bf16.mxu1 %v2526_v7 }
 0x822   :  { %2257 = vmatpush3.bf16.msra.mxu1 %v2394_v8 }
 0x823   :  { %2258 = vmatprep.subr.bf16.mxu1 %v2526_v7 }
 0x826   :  { %2259 = vmatpush3.bf16.msra.mxu1 %v2395_v20 }
 0x827   :  { %2260 = vmatprep.subr.bf16.mxu1 %v2526_v7 }
 0x82a   :  { %2261 = vmatpush3.bf16.msra.mxu1 %v2396_v25 }
 0x82b   :  { %2262 = vmatprep.subr.bf16.mxu1 %v2526_v7 }
 0x82e   :  { %2263 = vmatpush3.bf16.msra.mxu1 %v2397_v27 }
 0x82f   :  { %2264 = vmatprep.subr.bf16.mxu1 %v2526_v7 }
 0x832   :  { %2265 = vmatpush3.bf16.msra.mxu1 %v2398_v9 }
 0x833   :  { %2266 = vmatprep.subr.bf16.mxu1 %v2526_v7  ;;  %v1928_v7 = vrot.slane %v3920_v14, %v1927_v11 }
 0x836   :  { %2267 = vmatpush3.bf16.msra.mxu1 %v2399_v10 }
 0x839   :  { %2269 = vmatmul.mubr.bf16.vlgmr.msra.gmra.mrb[52].mxu1 %v1908_v37 }
 0x8ec   :  { %v1792_v18 = vpop.f32.mrb[48].mxu1 }
 0x8ed   :  { %v1793_v19 = vadd.f32 %v1792_v18, %v1709_v46  ;;  %v2230_v1 = vpop.f32.mrb[49].mxu1 }
 0x8ee   :  { %v1795_v39 = vpop.f32.mrb[50].mxu1 }
 0x8ef   :  { %v1798_v54 = vmax.f32 %v1793_v19, 0.0  ;;  %v2231_v28 = vpop.f32.mrb[51].mxu1 }
 0x8f1   :  { %v1799_v38 = vpack.c.bf16 %v1798_v54, %v1798_v54 }
 0x8f3   :  { %2249 = vmatmul.mubr.bf16.vlgmr.msra.gmra.mrb[52].mxu0 %v1799_v38 }
 0x90c   :  { %v2011_v13 = vpop.f32.mrb[52].mxu1 }
 0x90d   :  { %v2012_v12 = vadd.f32 %v2011_v13, %v1928_v7  ;;  %v2270_v33 = vpop.f32.mrb[53].mxu1 }
 0x90e   :  { %v2014_v16 = vpop.f32.mrb[54].mxu1 }
 0x90f   :  { %2029 = vst [vmem:[%s3988_s4] sm:$0xff] %v2012_v12  ;;  %v2271_v44 = vpop.f32.mrb[55].mxu1 }
 0x9c6   :  { %v1902_v55 = vpop.f32.mrb[52].mxu0 }
 0x9c7   :  { %v1903_v35 = vadd.f32 %v1902_v55, %v1819_v48  ;;  %v2250_v34 = vpop.f32.mrb[53].mxu0 }
 0x9c8   :  { %v1905_v56 = vpop.f32.mrb[54].mxu0 }
 0x9c9   :  { %2018 = vrot.lane.b32.xlu0 %v1903_v35, %s2528_s22  ;;  %v2251_v45 = vpop.f32.mrb[55].mxu0 }
 0xa3b   :  { %v2019_v26 = vpop.permute.xlu0 %2018 }
 0xa3c   :  { %v2021_v36 = vsub.f32 %v1903_v35, %v2019_v26 }
 0xa3e   :  { %v2155_v60 = vmul.f32 -1.442695, %v2021_v36 }
 0xa40   :  { %2488 = vpow2.f32 %v2155_v60 }
 0xa4a   :  { %v2489_v22 = vpop.eup %2488 }
 0xa4b   :  { %v2025_v40 = vadd.f32 1.0, %v2489_v22 }
 0xa4d   :  { %2490 = vrcp.f32 %v2025_v40 }
 0xa57   :  { %v2491_v41 = vpop.eup %2490 }
 0xa58   :  { %2032 = vperm.xlu1 %2279, %v2491_v41   ;;  %v2028_v42 = vsub.f32 1.0, %v2491_v41 }
 0xa5a   :  { %2038 = vperm.xlu0 %2278, %v2028_v42  }
 0xad7   :  { %v2033_v49 = vpop.permute.xlu1 %2032 }
 0xad8   :  { %v2035_v50 = vmul.f32 %v2033_v49, %v2012_v12 }
 0xad9   :  { %v2039_v43 = vpop.permute.xlu0 %2038 }
 0xada   :  { %v2041_v47 = vmul.f32 %v2039_v43, %v2012_v12 }
 0xadc   :  { %2043 = vrot.lane.b32.xlu1 %v2041_v47, %s2529_s23 }
 0xb4e   :  { %v2044_v32 = vpop.permute.xlu1 %2043 }
 0xb4f   :  { %v2046_v14 = vadd.f32 %v2044_v32, %v2035_v50 }
 0xb51   :  { %2048 = vst.msk [vmem:[%s3988_s4] sm:$0xff] %vm2047_vm2, %v2046_v14 }

</bundles_post_ra>
